<compile_context>
chip_gen: v7x
topology: tpu7x:2x2x1
jax: 0.10.0
libtpu: 0.0.40
codegen_flags: <defaults>
</compile_context>

<pallas_src>
import jax
import jax.numpy as jnp
from jax.experimental import pallas as pl
from jax.experimental.pallas import tpu as pltpu

LANE = 128  # lane width: pad feature / head dims up to a multiple of this


def _round_up(n, m):
    return ((n + m - 1) // m) * m


# ----------------------------- Pallas kernel ------------------------------- #

def make_fused_mlp_kernel(num_hidden):
    """Entire MLP for one (TILE_B, ·) batch tile.

    refs = (x, w1, b1, ..., w_h, b_h, w_out, b_out, out).
    Hidden layers: h = relu(h @ W + b)   (eval-mode BN already folded into W, b),
    kept in bf16 between layers, accumulated in f32 on the MXU.
    Head:          out = h @ W_out + b_out  (lane-padded N, dense f32 store).
    """
    def kernel(*refs):
        x_ref = refs[0]
        out_ref = refs[-1]
        p = refs[1:-1]                       # (w_t, b) pairs, 2*(num_hidden+1) refs
        h = x_ref[...]                       # bf16 (TILE_B, K_pad)
        for i in range(num_hidden):          # static unroll: shapes are compile-time
            w = p[2 * i][...]                # bf16 (in, out)
            b = p[2 * i + 1][...]            # f32  (1, out)
            y = jnp.dot(h, w, preferred_element_type=jnp.float32)
            h = jnp.maximum(y + b, 0.0).astype(w.dtype)   # bf16 for next MXU pass
        w = p[2 * num_hidden][...]
        b = p[2 * num_hidden + 1][...]
        y = jnp.dot(h, w, preferred_element_type=jnp.float32)
        out_ref[...] = (y + b).astype(out_ref.dtype)

    return kernel


# ------------------------- Parameter construction -------------------------- #

def init_flexible_fcnn_params(key, input_dim, hidden_dims, output_dim, eps=1e-5):
    """Kaiming-normal init (fan_in, relu gain), zero biases, fresh BatchNorm1d
    running stats (mean=0, var=1, gamma=1, beta=0) folded into (W, b).
    Weights stored transposed (in, out) in bf16; biases in f32.
    Layer-1 K is zero-padded to a multiple of 128; head N is lane-padded."""
    dims = [input_dim] + list(hidden_dims)
    k_pad = _round_up(input_dim, LANE)
    params = {"hidden": [], "out": None, "output_dim": output_dim,
              "input_dim": input_dim, "k_pad": k_pad}

    for i in range(len(dims) - 1):
        key, wk = jax.random.split(key)
        fan_in, fan_out = dims[i], dims[i + 1]
        std = (2.0 / fan_in) ** 0.5  # kaiming_normal_, nonlinearity='relu', fan_in
        w = jax.random.normal(wk, (fan_out, fan_in), dtype=jnp.float32) * std
        b = jnp.zeros((1, fan_out), dtype=jnp.float32)
        # Eval-mode BatchNorm1d: y = (x - mean)/sqrt(var+eps)*gamma + beta
        gamma = jnp.ones((1, fan_out), jnp.float32)
        beta = jnp.zeros((1, fan_out), jnp.float32)
        r_mean = jnp.zeros((1, fan_out), jnp.float32)
        r_var = jnp.ones((1, fan_out), jnp.float32)
        scale = gamma / jnp.sqrt(r_var + eps)            # (1, fan_out)
        shift = beta - r_mean * scale                    # (1, fan_out)
        w_t = w.T * scale                                # fold scale into columns
        b_folded = b * scale + shift                     # fold shift into bias (f32)
        if i == 0 and k_pad != fan_in:                   # zero-pad K to lane multiple
            w_t = jnp.zeros((k_pad, fan_out), jnp.float32).at[:fan_in, :].set(w_t)
        params["hidden"].append(dict(w_t=w_t.astype(jnp.bfloat16), b=b_folded))

    key, wk = jax.random.split(key)
    fan_in = dims[-1]
    std = (2.0 / fan_in) ** 0.5
    w_out = jax.random.normal(wk, (output_dim, fan_in), dtype=jnp.float32) * std
    b_out = jnp.zeros((1, output_dim), dtype=jnp.float32)
    # Lane-pad the head to a multiple of 128 columns (zeros) for a dense store.
    n_pad = _round_up(max(output_dim, 1), LANE)
    w_out_t_pad = jnp.zeros((fan_in, n_pad), jnp.float32).at[:, :output_dim].set(w_out.T)
    b_out_pad = jnp.zeros((1, n_pad), jnp.float32).at[:, :output_dim].set(b_out)
    params["out"] = dict(w_t_pad=w_out_t_pad.astype(jnp.bfloat16),
                         b_pad=b_out_pad, n_pad=n_pad)
    return params


# ------------------------------ Forward passes ------------------------------ #

def flexible_fcnn_forward_pallas(params, x, tile_b=128):
    bsz, in_dim = x.shape
    assert in_dim == params["input_dim"]
    k_pad = params["k_pad"]
    n_pad = params["out"]["n_pad"]
    out_dim = params["output_dim"]
    num_hidden = len(params["hidden"])

    # Batch tiling (rows of padded rows are zeros; their outputs are sliced off).
    tile_b = min(tile_b, _round_up(bsz, 8))
    b_pad = _round_up(bsz, tile_b)
    grid = (b_pad // tile_b,)

    # Wrapper-side: cast to bf16 and zero-pad batch + feature dims (layer-1 pad
    # rows of W1 are zero, so padded feature columns contribute nothing).
    x_p = jnp.pad(x.astype(jnp.bfloat16), ((0, b_pad - bsz), (0, k_pad - in_dim)))

    flat = []
    for layer in params["hidden"]:
        flat += [layer["w_t"], layer["b"]]
    flat += [params["out"]["w_t_pad"], params["out"]["b_pad"]]

    # x / out tiled over batch; weights & biases resident (constant index_map).
    in_specs = [pl.BlockSpec((tile_b, k_pad), lambda i: (i, 0))]
    in_specs += [pl.BlockSpec(a.shape, lambda i: (0, 0)) for a in flat]
    out_specs = pl.BlockSpec((tile_b, n_pad), lambda i: (i, 0))

    # Scheduler hint: 2*M*K*N flops per layer; bytes = x + weights + out.
    flops = 0
    for layer in params["hidden"]:
        ki, no = layer["w_t"].shape
        flops += 2 * b_pad * ki * no
    ki, no = params["out"]["w_t_pad"].shape
    flops += 2 * b_pad * ki * no
    weight_bytes = sum(int(a.size) * a.dtype.itemsize for a in flat)
    bytes_accessed = int(x_p.size * x_p.dtype.itemsize + weight_bytes
                         + b_pad * n_pad * 4)

    # VMEM budget: resident weights + double-buffered x/out tiles + activation
    # working set, with headroom; kept under v7x's 64 MiB / v5e's physical VMEM.
    max_width = max([k_pad] + [l["w_t"].shape[1] for l in params["hidden"]] + [n_pad])
    vmem_needed = (weight_bytes
                   + 2 * tile_b * k_pad * 2       # x tiles, bf16, double-buffered
                   + 2 * tile_b * n_pad * 4       # out tiles, f32, double-buffered
                   + 4 * tile_b * max_width * 4)  # in-flight activations (f32-equiv)
    vmem_limit = int(min(max(vmem_needed + (4 << 20), 16 << 20), 60 << 20))

    out_pad = pl.pallas_call(
        make_fused_mlp_kernel(num_hidden),
        out_shape=jax.ShapeDtypeStruct((b_pad, n_pad), jnp.float32),
        grid=grid,
        in_specs=in_specs,
        out_specs=out_specs,
        compiler_params=pltpu.CompilerParams(
            dimension_semantics=("parallel",),     # megacore sharding on v7x
            vmem_limit_bytes=vmem_limit),
        cost_estimate=pl.CostEstimate(flops=flops, transcendentals=0,
                                      bytes_accessed=bytes_accessed),
    )(x_p, *flat)
    return out_pad[:bsz, :out_dim]


def flexible_fcnn_forward_ref(params, x):
    """Pure-JAX reference mirroring the kernel's bf16 matmul / f32 accumulate."""
    k_pad = params["k_pad"]
    h = jnp.pad(x.astype(jnp.bfloat16), ((0, 0), (0, k_pad - x.shape[1])))
    for layer in params["hidden"]:
        y = jnp.dot(h, layer["w_t"], preferred_element_type=jnp.float32)
        h = jnp.maximum(y + layer["b"], 0.0).astype(jnp.bfloat16)
    y = jnp.dot(h, params["out"]["w_t_pad"], preferred_element_type=jnp.float32)
    return (y + params["out"]["b_pad"])[:, :params["output_dim"]]


# ----------------------------------- Main ----------------------------------- #

if __name__ == "__main__":
    key = jax.random.PRNGKey(0)

    batch = 256                        # >= 2 batch tiles -> exercises the grid
    input_dim = 64                     # padded to 128 inside init
    hidden_dims = [512, 256, 128, 64]  # module defaults
    output_dim = 1

    pkey, xkey = jax.random.split(key)
    params = init_flexible_fcnn_params(pkey, input_dim, hidden_dims, output_dim)
    x = jax.random.normal(xkey, (batch, input_dim), dtype=jnp.float32)

    y = flexible_fcnn_forward_pallas(params, x, tile_b=128)
    y = jax.block_until_ready(y)

    y_ref = flexible_fcnn_forward_ref(params, x)
    assert y.shape == (batch, output_dim), y.shape
    assert jnp.allclose(y, y_ref, rtol=1e-2, atol=1e-2), "mismatch vs JAX reference"

    print("KERNEL_OK")
</pallas_src>

<mosaic_0001>
module attributes {stable_mosaic.version = 11 : i64} {
  func.func @kernel(%arg0: i32, %arg1: memref<128x128xbf16, #tpu.memory_space<vmem>>, %arg2: memref<128x512xbf16, #tpu.memory_space<vmem>>, %arg3: memref<1x512xf32, #tpu.memory_space<vmem>>, %arg4: memref<512x256xbf16, #tpu.memory_space<vmem>>, %arg5: memref<1x256xf32, #tpu.memory_space<vmem>>, %arg6: memref<256x128xbf16, #tpu.memory_space<vmem>>, %arg7: memref<1x128xf32, #tpu.memory_space<vmem>>, %arg8: memref<128x64xbf16, #tpu.memory_space<vmem>>, %arg9: memref<1x64xf32, #tpu.memory_space<vmem>>, %arg10: memref<64x128xbf16, #tpu.memory_space<vmem>>, %arg11: memref<1x128xf32, #tpu.memory_space<vmem>>, %arg12: memref<128x128xf32, #tpu.memory_space<vmem>>) attributes {dimension_semantics = [#tpu.dimension_semantics<parallel>], iteration_bounds = array<i64: 2>, scalar_prefetch = 0 : i64, scratch_operands = 0 : i64, tpu.core_type = #tpu.core_type<tc>, window_params = [{transform_indices = @transform_0, window_bounds = array<i64: 128, 128>}, {pipeline_mode = #tpu.pipeline_mode<synchronous>, transform_indices = @transform_1, window_bounds = array<i64: 128, 512>}, {pipeline_mode = #tpu.pipeline_mode<synchronous>, transform_indices = @transform_2, window_bounds = array<i64: 1, 512>}, {pipeline_mode = #tpu.pipeline_mode<synchronous>, transform_indices = @transform_3, window_bounds = array<i64: 512, 256>}, {pipeline_mode = #tpu.pipeline_mode<synchronous>, transform_indices = @transform_4, window_bounds = array<i64: 1, 256>}, {pipeline_mode = #tpu.pipeline_mode<synchronous>, transform_indices = @transform_5, window_bounds = array<i64: 256, 128>}, {pipeline_mode = #tpu.pipeline_mode<synchronous>, transform_indices = @transform_6, window_bounds = array<i64: 1, 128>}, {pipeline_mode = #tpu.pipeline_mode<synchronous>, transform_indices = @transform_7, window_bounds = array<i64: 128, 64>}, {pipeline_mode = #tpu.pipeline_mode<synchronous>, transform_indices = @transform_8, window_bounds = array<i64: 1, 64>}, {pipeline_mode = #tpu.pipeline_mode<synchronous>, transform_indices = @transform_9, window_bounds = array<i64: 64, 128>}, {pipeline_mode = #tpu.pipeline_mode<synchronous>, transform_indices = @transform_10, window_bounds = array<i64: 1, 128>}, {transform_indices = @transform_11, window_bounds = array<i64: 128, 128>}]} {
    %c0 = arith.constant 0 : index
    %c0_0 = arith.constant 0 : index
    %0 = vector.load %arg1[%c0, %c0_0] : memref<128x128xbf16, #tpu.memory_space<vmem>>, vector<128x128xbf16>
    %c0_1 = arith.constant 0 : index
    %c0_2 = arith.constant 0 : index
    %1 = vector.load %arg2[%c0_1, %c0_2] : memref<128x512xbf16, #tpu.memory_space<vmem>>, vector<128x512xbf16>
    %c0_3 = arith.constant 0 : index
    %c0_4 = arith.constant 0 : index
    %2 = vector.load %arg3[%c0_3, %c0_4] : memref<1x512xf32, #tpu.memory_space<vmem>>, vector<1x512xf32>
    %cst = arith.constant dense<0.000000e+00> : vector<128x512xf32>
    %3 = tpu.matmul %0, %1, %cst {dimension_numbers = #tpu.dot_dimension_numbers<[1], [0], [0], [1], [0, 0, 1, 1], [], []>} : vector<128x128xbf16>, vector<128x512xbf16>, vector<128x512xf32> -> vector<128x512xf32>
    %4 = vector.broadcast %2 : vector<1x512xf32> to vector<128x512xf32>
    %5 = arith.addf %3, %4 : vector<128x512xf32>
    %cst_5 = arith.constant 0.000000e+00 : f32
    %6 = vector.broadcast %cst_5 : f32 to vector<128x512xf32>
    %7 = arith.maximumf %5, %6 : vector<128x512xf32>
    %8 = arith.truncf %7 : vector<128x512xf32> to vector<128x512xbf16>
    %c0_6 = arith.constant 0 : index
    %c0_7 = arith.constant 0 : index
    %9 = vector.load %arg4[%c0_6, %c0_7] : memref<512x256xbf16, #tpu.memory_space<vmem>>, vector<512x256xbf16>
    %c0_8 = arith.constant 0 : index
    %c0_9 = arith.constant 0 : index
    %10 = vector.load %arg5[%c0_8, %c0_9] : memref<1x256xf32, #tpu.memory_space<vmem>>, vector<1x256xf32>
    %cst_10 = arith.constant dense<0.000000e+00> : vector<128x256xf32>
    %11 = tpu.matmul %8, %9, %cst_10 {dimension_numbers = #tpu.dot_dimension_numbers<[1], [0], [0], [1], [0, 0, 1, 1], [], []>} : vector<128x512xbf16>, vector<512x256xbf16>, vector<128x256xf32> -> vector<128x256xf32>
    %12 = vector.broadcast %10 : vector<1x256xf32> to vector<128x256xf32>
    %13 = arith.addf %11, %12 : vector<128x256xf32>
    %cst_11 = arith.constant 0.000000e+00 : f32
    %14 = vector.broadcast %cst_11 : f32 to vector<128x256xf32>
    %15 = arith.maximumf %13, %14 : vector<128x256xf32>
    %16 = arith.truncf %15 : vector<128x256xf32> to vector<128x256xbf16>
    %c0_12 = arith.constant 0 : index
    %c0_13 = arith.constant 0 : index
    %17 = vector.load %arg6[%c0_12, %c0_13] : memref<256x128xbf16, #tpu.memory_space<vmem>>, vector<256x128xbf16>
    %c0_14 = arith.constant 0 : index
    %c0_15 = arith.constant 0 : index
    %18 = vector.load %arg7[%c0_14, %c0_15] : memref<1x128xf32, #tpu.memory_space<vmem>>, vector<1x128xf32>
    %cst_16 = arith.constant dense<0.000000e+00> : vector<128x128xf32>
    %19 = tpu.matmul %16, %17, %cst_16 {dimension_numbers = #tpu.dot_dimension_numbers<[1], [0], [0], [1], [0, 0, 1, 1], [], []>} : vector<128x256xbf16>, vector<256x128xbf16>, vector<128x128xf32> -> vector<128x128xf32>
    %20 = vector.broadcast %18 : vector<1x128xf32> to vector<128x128xf32>
    %21 = arith.addf %19, %20 : vector<128x128xf32>
    %cst_17 = arith.constant 0.000000e+00 : f32
    %22 = vector.broadcast %cst_17 : f32 to vector<128x128xf32>
    %23 = arith.maximumf %21, %22 : vector<128x128xf32>
    %24 = arith.truncf %23 : vector<128x128xf32> to vector<128x128xbf16>
    %c0_18 = arith.constant 0 : index
    %c0_19 = arith.constant 0 : index
    %25 = vector.load %arg8[%c0_18, %c0_19] : memref<128x64xbf16, #tpu.memory_space<vmem>>, vector<128x64xbf16>
    %c0_20 = arith.constant 0 : index
    %c0_21 = arith.constant 0 : index
    %26 = vector.load %arg9[%c0_20, %c0_21] : memref<1x64xf32, #tpu.memory_space<vmem>>, vector<1x64xf32>
    %cst_22 = arith.constant dense<0.000000e+00> : vector<128x64xf32>
    %27 = tpu.matmul %24, %25, %cst_22 {dimension_numbers = #tpu.dot_dimension_numbers<[1], [0], [0], [1], [0, 0, 1, 1], [], []>} : vector<128x128xbf16>, vector<128x64xbf16>, vector<128x64xf32> -> vector<128x64xf32>
    %28 = vector.broadcast %26 : vector<1x64xf32> to vector<128x64xf32>
    %29 = arith.addf %27, %28 : vector<128x64xf32>
    %cst_23 = arith.constant 0.000000e+00 : f32
    %30 = vector.broadcast %cst_23 : f32 to vector<128x64xf32>
    %31 = arith.maximumf %29, %30 : vector<128x64xf32>
    %32 = arith.truncf %31 : vector<128x64xf32> to vector<128x64xbf16>
    %c0_24 = arith.constant 0 : index
    %c0_25 = arith.constant 0 : index
    %33 = vector.load %arg10[%c0_24, %c0_25] : memref<64x128xbf16, #tpu.memory_space<vmem>>, vector<64x128xbf16>
    %c0_26 = arith.constant 0 : index
    %c0_27 = arith.constant 0 : index
    %34 = vector.load %arg11[%c0_26, %c0_27] : memref<1x128xf32, #tpu.memory_space<vmem>>, vector<1x128xf32>
    %cst_28 = arith.constant dense<0.000000e+00> : vector<128x128xf32>
    %35 = tpu.matmul %32, %33, %cst_28 {dimension_numbers = #tpu.dot_dimension_numbers<[1], [0], [0], [1], [0, 0, 1, 1], [], []>} : vector<128x64xbf16>, vector<64x128xbf16>, vector<128x128xf32> -> vector<128x128xf32>
    %36 = vector.broadcast %34 : vector<1x128xf32> to vector<128x128xf32>
    %37 = arith.addf %35, %36 : vector<128x128xf32>
    %c0_29 = arith.constant 0 : index
    %c0_30 = arith.constant 0 : index
    %38 = vector.load %arg12[%c0_29, %c0_30] : memref<128x128xf32, #tpu.memory_space<vmem>>, vector<128x128xf32>
    tpu.vector_store %arg12[%c0_29, %c0_30], %37 {strides = array<i32>} : memref<128x128xf32, #tpu.memory_space<vmem>>, vector<128x128xf32>,
    return
  }
  func.func @transform_0(%arg0: i32) -> (i32, i32) {
    %c0_i32 = arith.constant 0 : i32
    %c0_i32_0 = arith.constant 0 : i32
    return %arg0, %c0_i32 : i32, i32
  }
  func.func @transform_1(%arg0: i32) -> (i32, i32) {
    %c0_i32 = arith.constant 0 : i32
    %c0_i32_0 = arith.constant 0 : i32
    %c0_i32_1 = arith.constant 0 : i32
    return %c0_i32, %c0_i32_0 : i32, i32
  }
  func.func @transform_2(%arg0: i32) -> (i32, i32) {
    %c0_i32 = arith.constant 0 : i32
    %c0_i32_0 = arith.constant 0 : i32
    %c0_i32_1 = arith.constant 0 : i32
    return %c0_i32, %c0_i32_0 : i32, i32
  }
  func.func @transform_3(%arg0: i32) -> (i32, i32) {
    %c0_i32 = arith.constant 0 : i32
    %c0_i32_0 = arith.constant 0 : i32
    %c0_i32_1 = arith.constant 0 : i32
    return %c0_i32, %c0_i32_0 : i32, i32
  }
  func.func @transform_4(%arg0: i32) -> (i32, i32) {
    %c0_i32 = arith.constant 0 : i32
    %c0_i32_0 = arith.constant 0 : i32
    %c0_i32_1 = arith.constant 0 : i32
    return %c0_i32, %c0_i32_0 : i32, i32
  }
  func.func @transform_5(%arg0: i32) -> (i32, i32) {
    %c0_i32 = arith.constant 0 : i32
    %c0_i32_0 = arith.constant 0 : i32
    %c0_i32_1 = arith.constant 0 : i32
    return %c0_i32, %c0_i32_0 : i32, i32
  }
  func.func @transform_6(%arg0: i32) -> (i32, i32) {
    %c0_i32 = arith.constant 0 : i32
    %c0_i32_0 = arith.constant 0 : i32
    %c0_i32_1 = arith.constant 0 : i32
    return %c0_i32, %c0_i32_0 : i32, i32
  }
  func.func @transform_7(%arg0: i32) -> (i32, i32) {
    %c0_i32 = arith.constant 0 : i32
    %c0_i32_0 = arith.constant 0 : i32
    %c0_i32_1 = arith.constant 0 : i32
    return %c0_i32, %c0_i32_0 : i32, i32
  }
  func.func @transform_8(%arg0: i32) -> (i32, i32) {
    %c0_i32 = arith.constant 0 : i32
    %c0_i32_0 = arith.constant 0 : i32
    %c0_i32_1 = arith.constant 0 : i32
    return %c0_i32, %c0_i32_0 : i32, i32
  }
  func.func @transform_9(%arg0: i32) -> (i32, i32) {
    %c0_i32 = arith.constant 0 : i32
    %c0_i32_0 = arith.constant 0 : i32
    %c0_i32_1 = arith.constant 0 : i32
    return %c0_i32, %c0_i32_0 : i32, i32
  }
  func.func @transform_10(%arg0: i32) -> (i32, i32) {
    %c0_i32 = arith.constant 0 : i32
    %c0_i32_0 = arith.constant 0 : i32
    %c0_i32_1 = arith.constant 0 : i32
    return %c0_i32, %c0_i32_0 : i32, i32
  }
  func.func @transform_11(%arg0: i32) -> (i32, i32) {
    %c0_i32 = arith.constant 0 : i32
    %c0_i32_0 = arith.constant 0 : i32
    return %arg0, %c0_i32 : i32, i32
  }
}

</mosaic_0001>

<bundles_post_ra>
// kernel: tpu_custom_call.1
= control target key start
LH: loop header
LB: loop body
LE: loop exit
PB: predicated region body
PF: predicated region fallthrough
CT: control target
= control target key end

     0   :  { %s3907_s0 = inlined_call_operand.hbm [shape: bf16[256,128], index: 0, kind: input, shape index: {}]   ;;  %s3908_s1 = inlined_call_operand.hbm [shape: bf16[128,512], index: 1, kind: input, shape index: {}]   ;;  %s3909_s2 = inlined_call_operand.vmem [shape: f32[1,512], index: 2, kind: input, shape index: {}]   ;;  %s3910_s3 = inlined_call_operand.hbm [shape: bf16[512,256], index: 3, kind: input, shape index: {}]   ;;  %s3911_s4 = inlined_call_operand.vmem [shape: f32[1,256], index: 4, kind: input, shape index: {}]   ;;  %s3912_s5 = inlined_call_operand.hbm [shape: bf16[256,128], index: 5, kind: input, shape index: {}]   ;;  %s3913_s6 = inlined_call_operand.vmem [shape: f32[1,128], index: 6, kind: input, shape index: {}]   ;;  %s3914_s7 = inlined_call_operand.vmem [shape: bf16[128,64], index: 7, kind: input, shape index: {}]   ;;  %s3915_s8 = inlined_call_operand.vmem [shape: f32[1,64], index: 8, kind: input, shape index: {}]   ;;  %s3916_s9 = inlined_call_operand.vmem [shape: bf16[64,128], index: 9, kind: input, shape index: {}]   ;;  %s3917_s10 = inlined_call_operand.vmem [shape: f32[1,128], index: 10, kind: input, shape index: {}]   ;;  %s3918_s11 = inlined_call_operand.hbm [shape: f32[256,128], index: 11, kind: output, shape index: {}]  }
   0x1   :  { %3925 = sst [smem:[#allocation17_spill]] %s3908_s1 }
   0x2   :  { %3926 = sst [smem:[#allocation18_spill]] %s3917_s10 }
   0x3   :  { %3927 = sst [smem:[#allocation19_spill]] %s3918_s11 }
   0x4   :  { %16 = vsyncpa [#allocation3], 0 }
   0x5   :  { %18 = vsyncpa [#allocation3 + $0x1], 0 }
   0x6   :  { %19 = vsyncpa [#allocation6], 0 }
   0x7   :  { %20 = vsyncpa [#allocation9], 0 }
   0x8   :  { %21 = vsyncpa [#allocation4], 0 }
   0x9   :  { %23 = vsyncpa [#allocation4 + $0x1], 0  ;;  %s3370_s17 = smov 0   ;;  %s3372_s18 = smov 0  }
   0xa   :  { %s3374_s19 = smov 0   ;;  %s3376_s20 = smov 0  }
   0xb LB: > { %3928 = sst [smem:[#allocation15_spill]] %s3282_s17  ;;  %s3391_s21 = sadd.s32 4294967295, %s3294_s20   ;;  %s3294_s20 = sphi %s3376_s20, %s3955_s20   ;;  %s3290_s19 = sphi %s3374_s19, %s3954_s19   ;;  %s3286_s18 = sphi %s3372_s18, %s3953_s18   ;;  %s3282_s17 = sphi %s3370_s17, %s3952_s17  }
   0xc   : > { %s2463_s22 = sadd.s32 4294967294, %s3294_s20   ;;  %p49_p0 = scmp.ne.s32.totalorder %s3286_s18, %s3282_s17 }
   0xd   : > { %p3919_p1 = scmp.eq.s32.totalorder %s3391_s21, 0  ;;  %p289_p3 = scmp.eq.s32.totalorder %s2463_s22, 1 }
   0xe   : > { %p2464_p5 = scmp.ge.s32.totalorder %s3294_s20, 1  ;;  %p296_p7 = scmp.lt.s32.totalorder %s3294_s20, 3 }
   0xf   : > { %p3400_p4 = por %p3919_p1, %p49_p0  ;;  %p3405_p6 = por %p289_p3, %p49_p0 }
  0x10   : > { %p3410_p8 = pnand %p2464_p5, %p296_p7  ;;  %s3296_s26 = smov [#allocation5]  }
  0x11   : > { %s3929_s23 = scalar_select %p3400_p4, 1, 0 }
  0x12   : > { %s3930_s24 = scalar_select %p3405_p6, 1, 0 }
  0x13   : > { %s3932_s25 = scalar_select %p3410_p8, 1, 0 }
  0x14   : > { %3931 = sst [smem:[#allocation16_spill]] %s3930_s24  ;;  %s308_s27 = sshll.u32 %s3296_s26, 4  ;;  %s3414_s27 = int_to_ptr.vmem [resolvable:$true] %s308_s27 }
  0x15   : > { %p2856_p9 = pneg %p3410_p8  ;;  %s3297_s29 = smov [#allocation7]  }
  0x16   : > { %s324_s30 = sshll.u32 %s3297_s29, 4  ;;  %s3934_s1 = sld [smem:[#allocation17_spill]]  ;;  %s3425_s30 = int_to_ptr.vmem [resolvable:$true] %s324_s30 }
  0x17   : > { %p3421_p11 = pnand %p2856_p9, %p3919_p1 }
  0x19   : > { %p3435_p13 = pneg %p3421_p11 }
  0x1c   : > { %s3106_s14 = scalar_lea.hbm %s3934_s1, 4096 }
  0x1d   : > { %p3107_p12 = scmp.ne.s32.totalorder %s3934_s1, %s3106_s14  ;;  %p3113_p5 = scmp.lt.u32.totalorder %s3106_s14, %s3934_s1 }
  0x1f   : > { %p3109_p0 = pnand %p3435_p13, %p3107_p12 }
  0x21   : > { %p3110_p3 = pneg %p3109_p0 }
  0x23   : > { %p3115_p7 = pnand %p3113_p5, %p3110_p3 }
  0x25   : > { %3118 = shalt.err (!%p3115_p7)
}
  0x26   : > { %s3119_s12 = scalar_lea.vmem %s3414_s27, 4096  ;;  %p3127_p2 = scmp.lt.s32.totalorder %s3414_s27, %s3414_s27 }
  0x27   : > { %p3120_p9 = scmp.ne.s32.totalorder %s3414_s27, %s3119_s12  ;;  %p3128_p6 = scmp.lt.s32.totalorder %s3119_s12, %s3119_s12 }
  0x29   : > { %p3122_p10 = pnand %p3120_p9, %p3435_p13  ;;  %p3129_p12 = por %p3128_p6, %p3127_p2 }
  0x2b   : > { %p3123_p1 = pneg %p3122_p10 }
  0x2d   : > { %p3130_p0 = pnand %p3129_p12, %p3123_p1 }
  0x2f   : > { %3133 = shalt.err (!%p3130_p0)
}
  0x30   : > { %s3298_s13 = smov 256   ;;  %s3299_s14 = smov 16  }
  0x31   : > { %2859 = dma.hbm_to_vmem [thread:$0]  (!%p3421_p11), %s3934_s1, 4096, %s3414_s27, [#allocation6], %s3298_s13, %s3298_s13, %s3299_s14  }
  0x32   : > { %s3134_s24 = scalar_lea.hbm %s3910_s3, 8192 }
  0x33   : > { %p3135_p2 = scmp.ne.s32.totalorder %s3910_s3, %s3134_s24  ;;  %p3141_p10 = scmp.lt.u32.totalorder %s3134_s24, %s3910_s3 }
  0x35   : > { %p3137_p1 = pnand %p3135_p2, %p3435_p13 }
  0x37   : > { %p3138_p6 = pneg %p3137_p1 }
  0x39   : > { %p3143_p3 = pnand %p3141_p10, %p3138_p6 }
  0x3b   : > { %3146 = shalt.err (!%p3143_p3)
}
  0x3c   : > { %s3147_s27 = scalar_lea.vmem %s3425_s30, 8192  ;;  %p3155_p12 = scmp.lt.s32.totalorder %s3425_s30, %s3425_s30 }
  0x3d   : > { %p3148_p5 = scmp.ne.s32.totalorder %s3425_s30, %s3147_s27  ;;  %p3156_p0 = scmp.lt.s32.totalorder %s3147_s27, %s3147_s27 }
  0x3f   : > { %p3150_p7 = pnand %p3148_p5, %p3435_p13  ;;  %p3157_p2 = por %p3156_p0, %p3155_p12 }
  0x41   : > { %p3151_p9 = pneg %p3150_p7 }
  0x43   : > { %p3158_p1 = pnand %p3157_p2, %p3151_p9 }
  0x45   : > { %3161 = shalt.err (!%p3158_p1)
}
  0x46   : > { %s3300_s11 = smov 128   ;;  %s3301_s10 = smov 8  }
  0x47   : > { %2862 = dma.hbm_to_vmem [thread:$0]  (!%p3421_p11), %s3910_s3, 8192, %s3425_s30, [#allocation6], %s3300_s11, %s3300_s11, %s3301_s10  }
  0x48   : > { %s3302_s13 = smov [#allocation8]   ;;  %s3162_s26 = scalar_lea.hbm %s3912_s5, 2048 }
  0x49   : > { %s340_s14 = sshll.u32 %s3302_s13, 4  ;;  %p3163_p6 = scmp.ne.s32.totalorder %s3912_s5, %s3162_s26  ;;  %s341_s14 = int_to_ptr.vmem [resolvable:$true] %s340_s14 }
  0x4a   : > { %p3169_p5 = scmp.lt.u32.totalorder %s3162_s26, %s3912_s5 }
  0x4b   : > { %p3165_p10 = pnand %p3163_p6, %p3435_p13 }
  0x4d   : > { %p3166_p3 = pneg %p3165_p10 }
  0x4f   : > { %p3171_p7 = pnand %p3169_p5, %p3166_p3 }
  0x51   : > { %3174 = shalt.err (!%p3171_p7)
}
  0x52   : > { %s3175_s30 = scalar_lea.vmem %s341_s14, 2048  ;;  %p3183_p2 = scmp.lt.s32.totalorder %s341_s14, %s341_s14 }
  0x53   : > { %p3176_p9 = scmp.ne.s32.totalorder %s341_s14, %s3175_s30  ;;  %p3184_p1 = scmp.lt.s32.totalorder %s3175_s30, %s3175_s30 }
  0x55   : > { %p3178_p12 = pnand %p3176_p9, %p3435_p13  ;;  %p3185_p4 = por %p3184_p1, %p3183_p2 }
  0x57   : > { %p3179_p0 = pneg %p3178_p12 }
  0x59   : > { %p3186_p8 = pnand %p3185_p4, %p3179_p0 }
  0x5b   : > { %3189 = shalt.err (!%p3186_p8)
}
  0x5c   : > { %s3303_s11 = smov 64   ;;  %s3304_s1 = smov 4  }
  0x5d   : > { %2865 = dma.hbm_to_vmem [thread:$0]  (!%p3421_p11), %s3912_s5, 2048, %s341_s14, [#allocation9], %s3303_s11, %s3303_s11, %s3304_s1  }
  0x5e   : > { %s3501_s17 = sadd.s32 1, %s3294_s20   ;;  %s36_s13 = sadd.s32 1, %s3290_s19 }
  0x5f   : > { %s33_s24 = ssub.s32 %s3294_s20, %s3501_s17  ;;  %p43_p8 = scmp.ne.s32.totalorder %s3290_s19, %s3286_s18 }
  0x60   : > { %p34_p4 = scmp.eq.s32.totalorder %s33_s24, 0  ;;  %p44_p13 = scmp.eq.s32.totalorder %s3294_s20, 0 }
  0x61   : > { %p2877_p6 = scmp.lt.s32.totalorder %s3294_s20, 2  ;;  %p3936_p3 = scmp.eq.s32.totalorder %s3391_s21, 1 }
  0x62   : > { %s3511_s15 = scalar_select %p34_p4, %s3290_s19, %s36_s13  }
  0x63   : > { %p45_p10 = por %p44_p13, %p43_p8  ;;  %p3515_p5 = por %p3936_p3, %p43_p8 }
  0x64   : > { %s369_s16 = sand.u32 1, %s3290_s19   ;;  %s2626_s26 = sshll.u32 %s3294_s20, 10 }
  0x65   : > { %s2469_s14 = sshll.u32 %s369_s16, 6  ;;  %s3524_s27 = scalar_lea.hbm %s3907_s0, %s2626_s26 }
  0x66   : > { %s373_s30 = scalar_lea.vmem [#allocation2], %s2469_s14  ;;  %p3526_p11 = pnand %p2877_p6, %p45_p10 }
  0x67   : > { %s380_s22 = sshll.u32 %s373_s30, 4  ;;  %s3532_s24 = scalar_lea.sflag [#allocation3], %s369_s16  ;;  %s3530_s22 = int_to_ptr.vmem [resolvable:$true] %s380_s22 }
  0x68   : > { %s3190_s13 = scalar_lea.hbm %s3524_s27, 1024  ;;  %p3192_p9 = pneg %p3526_p11 }
  0x69   : > { %p3191_p7 = scmp.ne.s32.totalorder %s3524_s27, %s3190_s13  ;;  %s3195_s29 = scalar_lea.hbm %s3907_s0, 2048 }
  0x6a   : > { %p3196_p2 = scmp.lt.u32.totalorder %s3524_s27, %s3907_s0  ;;  %p3197_p1 = scmp.lt.u32.totalorder %s3195_s29, %s3190_s13 }
  0x6b   : > { %p3193_p12 = pnand %p3192_p9, %p3191_p7  ;;  %p3199_p8 = scmp.lt.u32.totalorder %s3190_s13, %s3524_s27 }
  0x6c   : > { %p3198_p4 = por %p3197_p1, %p3196_p2 }
  0x6d   : > { %p3194_p0 = pneg %p3193_p12 }
  0x6e   : > { %p3200_p13 = por %p3199_p8, %p3198_p4 }
  0x70   : > { %p3201_p6 = pnand %p3200_p13, %p3194_p0 }
  0x72   : > { %3204 = shalt.err (!%p3201_p6)
}
  0x73   : > { %s3205_s16 = scalar_lea.vmem %s3530_s22, 1024  ;;  %s3305_s26 = smov [#allocation2]  }
  0x74   : > { %p3206_p10 = scmp.ne.s32.totalorder %s3530_s22, %s3205_s16  ;;  %s3210_s14 = sshll.u32 %s3305_s26, 4  ;;  %s3211_s14 = int_to_ptr.vmem [resolvable:$false] %s3210_s14 }
  0x75   : > { %s3212_s12 = scalar_lea.vmem %s3211_s14, 2048  ;;  %p3213_p12 = scmp.lt.s32.totalorder %s3530_s22, %s3211_s14 }
  0x76   : > { %p3208_p3 = pnand %p3206_p10, %p3192_p9  ;;  %p3214_p2 = scmp.lt.s32.totalorder %s3212_s12, %s3205_s16 }
  0x78   : > { %p3209_p7 = pneg %p3208_p3  ;;  %p3215_p1 = por %p3214_p2, %p3213_p12 }
  0x7a   : > { %p3216_p4 = pnand %p3215_p1, %p3209_p7 }
  0x7c   : > { %3219 = shalt.err (!%p3216_p4)
}
  0x7d   : > { %2869 = dma.hbm_to_vmem [thread:$0]  (!%p3526_p11), %s3524_s27, 1024, %s3530_s22, %s3532_s24, %s3303_s11, %s3303_s11, %s3304_s1  }
  0x7e   : > { %p3939_p9 = scmp.ne.s32.totalorder %s3932_s25, 0 }
  0x7f   : > { %s3566_s13 = sand.u32 (!%p3939_p9), 1, %s3286_s18   ;;  %p3940_p0 = scmp.ne.s32.totalorder (!%p3939_p9), %s3929_s23, 0 }
  0x80   : > { %392 = sbr.rel (%p3939_p9) target bundleno = 1418 (0x58a), region = 64  ;;  %s2473_s29 = sshll.u32 (!%p3939_p9), %s3566_s13, 6 }
  0x81   : > { %s395_s30 = scalar_lea.sflag (!%p3939_p9), [#allocation3], %s3566_s13  ;;  %s3570_s16 = scalar_lea.vmem (!%p3939_p9), [#allocation2], %s2473_s29 }
  0x87   : > { %3265 = dma.done.wait (%p3940_p0), %s395_s30, 1024  }
  0x88   : > { %3267 = vsyncadd (%p3940_p0), %s395_s30, 4294966272  ;;  %p3941_p11 = scmp.eq.s32.totalorder %s3391_s21, 0 }
  0x8a   : > { %3269 = dma.done.wait (%p3941_p11), [#allocation6], 12288   ;;  %p3942_p8 = pmov %p3941_p11 }
  0x8c   : > { %3271 = vsyncadd (%p3942_p8), [#allocation6], 4294955008  ;;  %p3943_p13 = pmov %p3942_p8 }
  0x8d   : > { %p3944_p6 = pmov %p3942_p8 }
  0x8e   : > { %3273 = dma.done.wait (%p3943_p13), [#allocation9], 2048  }
  0x8f   : > { %3275 = vsyncadd (%p3944_p6), [#allocation9], 4294965248  ;;  %v3306_v0 = vmov 0   ;;  %v2926_v1 = vld [vmem:[#allocation5 + $0x4] ss:$16 sps:$4 sm:$0xff]   ;;  %v2951_v36 = vld [vmem:[%s3570_s16 + $0x8] sm:$0xff]  }
  0x90   : > { %762 = vmatprep.mubr.bf16.mxu0 %v3306_v0  ;;  %875 = vmatprep.mubr.bf16.mxu1 %v3306_v0  ;;  %v2928_v2 = vld [vmem:[#allocation5] ss:$16 sps:$4 sm:$0xff]   ;;  %v2929_v3 = vld [vmem:[#allocation5 + $0x24] ss:$16 sps:$4 sm:$0xff]   ;;  %v2954_v11 = vld [vmem:[#allocation5 + $0xc] ss:$16 sps:$4 sm:$0xff]  }
  0x91   : > { %730 = vmatprep.subr.bf16.mxu0 %v2926_v1  ;;  %v2931_v4 = vld [vmem:[#allocation5 + $0x20] ss:$16 sps:$4 sm:$0xff]   ;;  %v2932_v5 = vld [vmem:[#allocation5 + $0x44] ss:$16 sps:$4 sm:$0xff]   ;;  %v2956_v12 = vld [vmem:[#allocation5 + $0x8] ss:$16 sps:$4 sm:$0xff]   ;;  %843 = vmatprep.subr.bf16.mxu1 %v2954_v11  ;;  %v502_v11 = vlaneseq }
  0x92   : > { %731 = vmatpush1.bf16.msra.mxu0 %v2928_v2  ;;  %v2934_v6 = vld [vmem:[#allocation5 + $0x40] ss:$16 sps:$4 sm:$0xff]   ;;  %v2935_v7 = vld [vmem:[#allocation5 + $0x64] ss:$16 sps:$4 sm:$0xff]   ;;  %v2958_v14 = vld [vmem:[#allocation5 + $0x2c] ss:$16 sps:$4 sm:$0xff]   ;;  %844 = vmatpush1.bf16.msra.mxu1 %v2956_v12 }
  0x93   : > { %732 = vmatprep.subr.bf16.mxu0 %v2929_v3  ;;  %v2937_v8 = vld [vmem:[#allocation5 + $0x60] ss:$16 sps:$4 sm:$0xff]   ;;  %v2938_v9 = vld [vmem:[#allocation5 + $0x84] ss:$16 sps:$4 sm:$0xff]   ;;  %v2960_v15 = vld [vmem:[#allocation5 + $0x28] ss:$16 sps:$4 sm:$0xff]   ;;  %845 = vmatprep.subr.bf16.mxu1 %v2958_v14 }
  0x94   : > { %v2940_v10 = vld [vmem:[#allocation5 + $0x80] ss:$16 sps:$4 sm:$0xff]   ;;  %v2941_v13 = vld [vmem:[#allocation5 + $0xa4] ss:$16 sps:$4 sm:$0xff]   ;;  %v2961_v17 = vld [vmem:[#allocation5 + $0x4c] ss:$16 sps:$4 sm:$0xff]  }
  0x95   : > { %v2943_v16 = vld [vmem:[#allocation5 + $0xa0] ss:$16 sps:$4 sm:$0xff]   ;;  %v2944_v18 = vld [vmem:[#allocation5 + $0xc4] ss:$16 sps:$4 sm:$0xff]   ;;  %v2963_v20 = vld [vmem:[#allocation5 + $0x48] ss:$16 sps:$4 sm:$0xff]  }
  0x96   : > { %733 = vmatpush1.bf16.msra.mxu0 %v2931_v4  ;;  %v2946_v19 = vld [vmem:[#allocation5 + $0xc0] ss:$16 sps:$4 sm:$0xff]   ;;  %846 = vmatpush1.bf16.msra.mxu1 %v2960_v15  ;;  %v2965_v21 = vld [vmem:[#allocation5 + $0x6c] ss:$16 sps:$4 sm:$0xff]   ;;  %v2947_v22 = vld [vmem:[#allocation5 + $0xe4] ss:$16 sps:$4 sm:$0xff]  }
  0x97   : > { %734 = vmatprep.subr.bf16.mxu0 %v2932_v5  ;;  %847 = vmatprep.subr.bf16.mxu1 %v2961_v17  ;;  %v2949_v23 = vld [vmem:[#allocation5 + $0xe0] ss:$16 sps:$4 sm:$0xff]   ;;  %v2967_v24 = vld [vmem:[#allocation5 + $0x68] ss:$16 sps:$4 sm:$0xff]   ;;  %v2968_v25 = vld [vmem:[#allocation5 + $0x8c] ss:$16 sps:$4 sm:$0xff]  }
  0x98   : > { %v2950_v26 = vld [vmem:[%s3570_s16] sm:$0xff]   ;;  %v2970_v27 = vld [vmem:[#allocation5 + $0x88] ss:$16 sps:$4 sm:$0xff]   ;;  %v2972_v29 = vld [vmem:[#allocation5 + $0xac] ss:$16 sps:$4 sm:$0xff]   ;;  %v3608_v12 = vshrl.u32 %v502_v11, 7 }
  0x99   : > { %v2984_v28 = vld [vmem:[#allocation7 + $0x4] ss:$8 sps:$4 sm:$0xff]   ;;  %v2982_v30 = vld [vmem:[#allocation7] ss:$8 sps:$4 sm:$0xff]   ;;  %v2987_v31 = vld [vmem:[#allocation7 + $0x14] ss:$8 sps:$4 sm:$0xff]  }
  0x9a   : > { %735 = vmatpush1.bf16.msra.mxu0 %v2934_v6  ;;  %848 = vmatpush1.bf16.msra.mxu1 %v2963_v20  ;;  %v2974_v32 = vld [vmem:[#allocation5 + $0xa8] ss:$16 sps:$4 sm:$0xff]   ;;  %v2975_v33 = vld [vmem:[#allocation5 + $0xcc] ss:$16 sps:$4 sm:$0xff]   ;;  %v2952_v44 = vld [vmem:[%s3570_s16 + $0x10] sm:$0xff]   ;;  %v508_v14 = vsub.s32 1, %v3608_v12 }
  0x9b   : > { %736 = vmatprep.subr.bf16.mxu0 %v2935_v7  ;;  %849 = vmatprep.subr.bf16.mxu1 %v2965_v21  ;;  %v2985_v34 = vld [vmem:[#allocation7 + $0x10] ss:$8 sps:$4 sm:$0xff]   ;;  %v2990_v35 = vld [vmem:[#allocation7 + $0x24] ss:$8 sps:$4 sm:$0xff]   ;;  %v2988_v39 = vld [vmem:[#allocation7 + $0x20] ss:$8 sps:$4 sm:$0xff]  }
  0x9c   : > { %v2977_v37 = vld [vmem:[#allocation5 + $0xc8] ss:$16 sps:$4 sm:$0xff]   ;;  %v2979_v38 = vld [vmem:[#allocation5 + $0xec] ss:$16 sps:$4 sm:$0xff]   ;;  %v2957_v54 = vld [vmem:[%s3570_s16 + $0x20] sm:$0xff]   ;;  %vm2209_vm0 = vcmask 523264  }
  0x9d   : > { %v2993_v40 = vld [vmem:[#allocation7 + $0x34] ss:$8 sps:$4 sm:$0xff]   ;;  %v2981_v41 = vld [vmem:[#allocation5 + $0xe8] ss:$16 sps:$4 sm:$0xff]   ;;  %v2996_v43 = vld [vmem:[#allocation7 + $0x44] ss:$8 sps:$4 sm:$0xff]  }
  0x9e   : > { %737 = vmatpush1.bf16.msra.mxu0 %v2937_v8  ;;  %850 = vmatpush1.bf16.msra.mxu1 %v2967_v24  ;;  %v2991_v42 = vld [vmem:[#allocation7 + $0x30] ss:$8 sps:$4 sm:$0xff]   ;;  %v2994_v45 = vld [vmem:[#allocation7 + $0x40] ss:$8 sps:$4 sm:$0xff]   ;;  %v2999_v46 = vld [vmem:[#allocation7 + $0x54] ss:$8 sps:$4 sm:$0xff]  }
  0x9f   : > { %738 = vmatprep.subr.bf16.mxu0 %v2938_v9  ;;  %851 = vmatprep.subr.bf16.mxu1 %v2968_v25  ;;  %v2997_v47 = vld [vmem:[#allocation7 + $0x50] ss:$8 sps:$4 sm:$0xff]   ;;  %v3002_v48 = vld [vmem:[#allocation7 + $0x64] ss:$8 sps:$4 sm:$0xff]   ;;  %v3000_v50 = vld [vmem:[#allocation7 + $0x60] ss:$8 sps:$4 sm:$0xff]  }
  0xa0   : > { %v2953_v49 = vld [vmem:[%s3570_s16 + $0x18] sm:$0xff]   ;;  %v3008_v53 = vld [vmem:[#allocation7 + $0x84] ss:$8 sps:$4 sm:$0xff]   ;;  %v3006_v55 = vld [vmem:[#allocation7 + $0x80] ss:$8 sps:$4 sm:$0xff]   ;;  %s2477_s27 = sshll.u32 %s3566_s13, 7 }
  0xa1   : > { %v3005_v51 = vld [vmem:[#allocation7 + $0x74] ss:$8 sps:$4 sm:$0xff]   ;;  %v3003_v52 = vld [vmem:[#allocation7 + $0x70] ss:$8 sps:$4 sm:$0xff]   ;;  %v3014_v58 = vld [vmem:[#allocation7 + $0xa4] ss:$8 sps:$4 sm:$0xff]  }
  0xa2   : > { %739 = vmatpush1.bf16.msra.mxu0 %v2940_v10  ;;  %852 = vmatpush1.bf16.msra.mxu1 %v2970_v27  ;;  %v3011_v56 = vld [vmem:[#allocation7 + $0x94] ss:$8 sps:$4 sm:$0xff]   ;;  %v3009_v57 = vld [vmem:[#allocation7 + $0x90] ss:$8 sps:$4 sm:$0xff]   ;;  %v2964_v59 = vld [vmem:[%s3570_s16 + $0x28] sm:$0xff]   ;;  %s3945_s24 = sld [smem:[#allocation18_spill]] }
  0xa3   : > { %740 = vmatprep.subr.bf16.mxu0 %v2941_v13  ;;  %853 = vmatprep.subr.bf16.mxu1 %v2972_v29  ;;  %v3012_v60 = vld [vmem:[#allocation7 + $0xa0] ss:$8 sps:$4 sm:$0xff]   ;;  %v3017_v61 = vld [vmem:[#allocation7 + $0xb4] ss:$8 sps:$4 sm:$0xff]   ;;  %v3015_v62 = vld [vmem:[#allocation7 + $0xb0] ss:$8 sps:$4 sm:$0xff]  }
  0xa4   : > { %v3020_v63 = vld [vmem:[#allocation7 + $0xc4] ss:$8 sps:$4 sm:$0xff]   ;;  %v2971_v1 = vld [vmem:[%s3570_s16 + $0x30] sm:$0xff]   ;;  %v3018_v2 = vld [vmem:[#allocation7 + $0xc0] ss:$8 sps:$4 sm:$0xff]   ;;  %v504_v13 = vsub.s32 0, %v3608_v12 }
  0xa5   : > { %v3023_v3 = vld [vmem:[#allocation7 + $0xd4] ss:$8 sps:$4 sm:$0xff]   ;;  %v3021_v4 = vld [vmem:[#allocation7 + $0xd0] ss:$8 sps:$4 sm:$0xff]   ;;  %v3026_v6 = vld [vmem:[#allocation7 + $0xe4] ss:$8 sps:$4 sm:$0xff]  }
  0xa6   : > { %741 = vmatpush1.bf16.msra.mxu0 %v2943_v16  ;;  %854 = vmatpush1.bf16.msra.mxu1 %v2974_v32  ;;  %v2978_v5 = vld [vmem:[%s3570_s16 + $0x38] sm:$0xff]   ;;  %v3024_v7 = vld [vmem:[#allocation7 + $0xe0] ss:$8 sps:$4 sm:$0xff]   ;;  %v3032_v10 = vld [vmem:[#allocation7 + $0x104] ss:$8 sps:$4 sm:$0xff]   ;;  %s3838_s26 = scalar_lea.vmem [#allocation10], %s2477_s27 }
  0xa7   : > { %742 = vmatprep.subr.bf16.mxu0 %v2944_v18  ;;  %855 = vmatprep.subr.bf16.mxu1 %v2975_v33  ;;  %v3029_v8 = vld [vmem:[#allocation7 + $0xf4] ss:$8 sps:$4 sm:$0xff]   ;;  %v3027_v9 = vld [vmem:[#allocation7 + $0xf0] ss:$8 sps:$4 sm:$0xff]   ;;  %v3078_v24 = vld [vmem:[#allocation8 + $0x40] sm:$0xff]   ;;  %s2627_s14 = sshll.u32 %s3391_s21, 11 }
  0xa8   : > { %v3079_v25 = vld [vmem:[#allocation8] sm:$0xff]   ;;  %v3081_v32 = vld [vmem:[#allocation8 + $0x8] sm:$0xff]   ;;  %s2361_s12 = sshll.u32 %s3838_s26, 4  ;;  %s3946_s16 = sld [smem:[#allocation19_spill]]  ;;  %s3860_s12 = int_to_ptr.vmem [resolvable:$true] %s2361_s12 }
  0xa9   : > { %s2348_s21 = scalar_lea.sflag [#allocation4], %s3566_s13  ;;  %s3220_s25 = scalar_lea.vmem %s3860_s12, 2048 }
  0xaa   : > { %743 = vmatpush1.bf16.msra.mxu0 %v2946_v19  ;;  %856 = vmatpush1.bf16.msra.mxu1 %v2977_v37  ;;  %v3030_v37 = vld [vmem:[#allocation7 + $0x100] ss:$8 sps:$4 sm:$0xff]   ;;  %p3221_p10 = scmp.ne.s32.totalorder %s3860_s12, %s3220_s25  ;;  %s3307_s11 = smov [#allocation10]  }
  0xab   : > { %744 = vmatprep.subr.bf16.mxu0 %v2947_v22  ;;  %857 = vmatprep.subr.bf16.mxu1 %v2979_v38  ;;  %v512_v38 = vsub.s32 2, %v3608_v12  ;;  %s3224_s1 = sshll.u32 %s3307_s11, 4  ;;  %s3225_s1 = int_to_ptr.vmem [resolvable:$false] %s3224_s1 }
  0xac   : > { %p3222_p3 = pnand %p3221_p10, %p3515_p5  ;;  %s3226_s27 = scalar_lea.vmem %s3225_s1, 4096 }
  0xad   : > { %p3227_p12 = scmp.lt.s32.totalorder %s3860_s12, %s3225_s1  ;;  %p3228_p2 = scmp.lt.s32.totalorder %s3226_s27, %s3220_s25 }
  0xae   : > { %745 = vmatpush1.bf16.msra.mxu0 %v2949_v23  ;;  %858 = vmatpush1.bf16.msra.mxu1 %v2981_v41  ;;  %v3035_v41 = vld [vmem:[#allocation7 + $0x114] ss:$8 sps:$4 sm:$0xff]   ;;  %s3858_s23 = scalar_lea.hbm %s3946_s16, %s2627_s14  ;;  %p3223_p7 = pneg %p3222_p3 }
  0xaf   : > { %1448 = vmatprep.subr.bf16.mxu0 %v2984_v28  ;;  %2628 = vmatprep.subr.bf16.mxu1 %v3078_v24  ;;  %p3229_p1 = por %p3228_p2, %p3227_p12 }
  0xb1   : > { %763 = vmatmul.mubr.bf16.vlgmr.msra.gmra.mrb[0].mxu0 %v2950_v26  ;;  %876 = vmatmul.mubr.bf16.vlgmr.msra.gmra.mrb[0].mxu1 %v2950_v26  ;;  %v3080_v26 = vld [vmem:[#allocation8 + $0x48] sm:$0xff]   ;;  %p3230_p4 = pnand %p3229_p1, %p3223_p7 }
  0xb2   : > { %772 = vmatprep.mubr.bf16.mxu0 %v3306_v0  ;;  %1449 = vmatpush1.bf16.msra.mxu0 %v2982_v30 }
  0xb3   : > { %1450 = vmatprep.subr.bf16.mxu0 %v2987_v31  ;;  %885 = vmatprep.mubr.bf16.mxu1 %v3306_v0 }
  0xb4   : > { %2629 = vmatpush3.bf16.msra.mxu1 %v3079_v25  ;;  %v3039_v25 = vld [vmem:[#allocation7 + $0x130] ss:$8 sps:$4 sm:$0xff]  }
  0xb5   : > { %2630 = vmatprep.subr.bf16.mxu1 %v3080_v26 }
  0xb6   : > { %1451 = vmatpush1.bf16.msra.mxu0 %v2985_v34  ;;  %v3082_v34 = vld [vmem:[#allocation8 + $0x50] sm:$0xff]  }
  0xb7   : > { %1452 = vmatprep.subr.bf16.mxu0 %v2990_v35 }
  0xb8   : > { %2631 = vmatpush3.bf16.msra.mxu1 %v3081_v32 }
  0xb9   : > { %773 = vmatmul.mubr.bf16.gmra.mrb[4].mxu0 %v2951_v36  ;;  %886 = vmatmul.mubr.bf16.gmra.mrb[4].mxu1 %v2951_v36 }
  0xba   : > { %782 = vmatprep.mubr.bf16.mxu0 %v3306_v0  ;;  %1453 = vmatpush1.bf16.msra.mxu0 %v2988_v39 }
  0xbb   : > { %1454 = vmatprep.subr.bf16.mxu0 %v2993_v40  ;;  %895 = vmatprep.mubr.bf16.mxu1 %v3306_v0 }
  0xbc   : > { %2632 = vmatprep.subr.bf16.mxu1 %v3082_v34  ;;  %v3089_v34 = vld [vmem:[#allocation8 + $0x28] sm:$0xff]  }
  0xbe   : > { %1455 = vmatpush1.bf16.msra.mxu0 %v2991_v42  ;;  %v516_v42 = vsub.s32 3, %v3608_v12 }
  0xbf   : > { %1456 = vmatprep.subr.bf16.mxu0 %v2996_v43 }
  0xc1   : > { %783 = vmatmul.mubr.bf16.gmra.mrb[8].mxu0 %v2952_v44  ;;  %896 = vmatmul.mubr.bf16.gmra.mrb[8].mxu1 %v2952_v44 }
  0xc2   : > { %792 = vmatprep.mubr.bf16.mxu0 %v3306_v0  ;;  %1457 = vmatpush1.bf16.msra.mxu0 %v2994_v45  ;;  %v3083_v45 = vld [vmem:[#allocation8 + $0x10] sm:$0xff]  }
  0xc3   : > { %1458 = vmatprep.subr.bf16.mxu0 %v2999_v46  ;;  %905 = vmatprep.mubr.bf16.mxu1 %v3306_v0 }
  0xc4   : > { %2633 = vmatpush3.bf16.msra.mxu1 %v3083_v45 }
  0xc6   : > { %1459 = vmatpush1.bf16.msra.mxu0 %v2997_v47 }
  0xc7   : > { %1460 = vmatprep.subr.bf16.mxu0 %v3002_v48  ;;  %v3084_v48 = vld [vmem:[#allocation8 + $0x58] sm:$0xff]  }
  0xc8   : > { %2634 = vmatprep.subr.bf16.mxu1 %v3084_v48 }
  0xc9   : > { %793 = vmatmul.mubr.bf16.gmra.mrb[12].mxu0 %v2953_v49  ;;  %906 = vmatmul.mubr.bf16.gmra.mrb[12].mxu1 %v2953_v49 }
  0xca   : > { %802 = vmatprep.mubr.bf16.mxu0 %v3306_v0  ;;  %1461 = vmatpush1.bf16.msra.mxu0 %v3000_v50  ;;  %v3033_v50 = vld [vmem:[#allocation7 + $0x110] ss:$8 sps:$4 sm:$0xff]  }
  0xcb   : > { %1462 = vmatprep.subr.bf16.mxu0 %v3005_v51  ;;  %915 = vmatprep.mubr.bf16.mxu1 %v3306_v0 }
  0xce   : > { %1463 = vmatpush1.bf16.msra.mxu0 %v3003_v52 }
  0xcf   : > { %1464 = vmatprep.subr.bf16.mxu0 %v3008_v53 }
  0xd1   : > { %803 = vmatmul.mubr.bf16.gmra.mrb[16].mxu0 %v2957_v54  ;;  %916 = vmatmul.mubr.bf16.gmra.mrb[16].mxu1 %v2957_v54  ;;  %v3038_v54 = vld [vmem:[#allocation7 + $0x124] ss:$8 sps:$4 sm:$0xff]  }
  0xd2   : > { %812 = vmatprep.mubr.bf16.mxu0 %v3306_v0  ;;  %1465 = vmatpush1.bf16.msra.mxu0 %v3006_v55 }
  0xd3   : > { %1466 = vmatprep.subr.bf16.mxu0 %v3011_v56  ;;  %925 = vmatprep.mubr.bf16.mxu1 %v3306_v0 }
  0xd6   : > { %1467 = vmatpush1.bf16.msra.mxu0 %v3009_v57 }
  0xd7   : > { %1468 = vmatprep.subr.bf16.mxu0 %v3014_v58  ;;  %v3085_v58 = vld [vmem:[#allocation8 + $0x18] sm:$0xff]  }
  0xd8   : > { %2635 = vmatpush3.bf16.msra.mxu1 %v3085_v58 }
  0xd9   : > { %813 = vmatmul.mubr.bf16.gmra.mrb[20].mxu0 %v2964_v59  ;;  %926 = vmatmul.mubr.bf16.gmra.mrb[20].mxu1 %v2964_v59 }
  0xda   : > { %822 = vmatprep.mubr.bf16.mxu0 %v3306_v0  ;;  %1469 = vmatpush1.bf16.msra.mxu0 %v3012_v60 }
  0xdb   : > { %1470 = vmatprep.subr.bf16.mxu0 %v3017_v61  ;;  %935 = vmatprep.mubr.bf16.mxu1 %v3306_v0  ;;  %v3086_v61 = vld [vmem:[#allocation8 + $0x60] sm:$0xff]  }
  0xdc   : > { %2636 = vmatprep.subr.bf16.mxu1 %v3086_v61 }
  0xde   : > { %1471 = vmatpush1.bf16.msra.mxu0 %v3015_v62 }
  0xdf   : > { %1472 = vmatprep.subr.bf16.mxu0 %v3020_v63 }
  0xe1   : > { %823 = vmatmul.mubr.bf16.gmra.mrb[24].mxu0 %v2971_v1  ;;  %936 = vmatmul.mubr.bf16.gmra.mrb[24].mxu1 %v2971_v1  ;;  %v3036_v1 = vld [vmem:[#allocation7 + $0x120] ss:$8 sps:$4 sm:$0xff]  }
  0xe2   : > { %832 = vmatprep.mubr.bf16.mxu0 %v3306_v0  ;;  %1473 = vmatpush1.bf16.msra.mxu0 %v3018_v2 }
  0xe3   : > { %1474 = vmatprep.subr.bf16.mxu0 %v3023_v3  ;;  %945 = vmatprep.mubr.bf16.mxu1 %v3306_v0  ;;  %v500_v0 = vld [vmem:[%s3909_s2] sm:$0xf] }
  0xe4   : > { %v3617_v15 = vrot.slane %v500_v0, %v504_v13  ;;  %v3621_v16 = vrot.slane %v500_v0, %v508_v14  ;;  %v3633_v51 = vrot.slane %v500_v0, %v512_v38  ;;  %v3635_v55 = vrot.slane %v500_v0, %v516_v42  ;;  %v3090_v38 = vld [vmem:[#allocation8 + $0x70] sm:$0xff]  }
  0xe6   : > { %1475 = vmatpush1.bf16.msra.mxu0 %v3021_v4 }
  0xe7   : > { %1476 = vmatprep.subr.bf16.mxu0 %v3026_v6  ;;  %v3041_v6 = vld [vmem:[#allocation7 + $0x134] ss:$8 sps:$4 sm:$0xff]  }
  0xe9   : > { %833 = vmatmul.mubr.bf16.gmra.mrb[28].mxu0 %v2978_v5  ;;  %946 = vmatmul.mubr.bf16.gmra.mrb[28].mxu1 %v2978_v5 }
  0xea   : > { %1477 = vmatpush1.bf16.msra.mxu0 %v3024_v7 }
  0xeb   : > { %1478 = vmatprep.subr.bf16.mxu0 %v3029_v8 }
  0xee   : > { %1479 = vmatpush1.bf16.msra.mxu0 %v3027_v9 }
  0xef   : > { %1561 = vmatprep.subr.bf16.mxu0 %v3032_v10 }
 0x184   : > { %v764_v17 = vpop.f32.mrb[0].mxu0  ;;  %v877_v60 = vpop.f32.mrb[0].mxu1 }
 0x185   : > { %v765_v18 = vadd.f32 %v764_v17, %v3617_v15  ;;  %v766_v19 = vpop.f32.mrb[1].mxu0  ;;  %v878_v2 = vadd.f32 %v877_v60, %v3633_v51  ;;  %v879_v3 = vpop.f32.mrb[1].mxu1 }
 0x186   : > { %v767_v20 = vadd.f32 %v766_v19, %v3621_v16  ;;  %v768_v21 = vpop.f32.mrb[2].mxu0  ;;  %v880_v7 = vadd.f32 %v879_v3, %v3635_v55  ;;  %v881_v8 = vpop.f32.mrb[2].mxu1  ;;  %v3050_v3 = vld [vmem:[#allocation7 + $0x164] ss:$8 sps:$4 sm:$0xff]  }
 0x187   : > { %v769_v22 = vadd.f32 %v768_v21, %v3617_v15  ;;  %v770_v23 = vpop.f32.mrb[3].mxu0  ;;  %v956_v28 = vmax.f32 %v765_v18, 0.0  ;;  %v958_v11 = vmax.f32 %v878_v2, 0.0  ;;  %v882_v0 = vadd.f32 %v881_v8, %v3633_v51  ;;  %v883_v17 = vpop.f32.mrb[3].mxu1  ;;  %v3087_v18 = vld [vmem:[#allocation8 + $0x20] sm:$0xff]  }
 0x188   : > { %v771_v27 = vadd.f32 %v770_v23, %v3621_v16  ;;  %v957_v30 = vmax.f32 %v767_v20, 0.0  ;;  %v959_v21 = vmax.f32 %v880_v7, 0.0  ;;  %v3088_v23 = vld [vmem:[#allocation8 + $0x68] sm:$0xff]   ;;  %2637 = vmatpush3.bf16.msra.mxu1 %v3087_v18 }
 0x189   : > { %v960_v29 = vmax.f32 %v769_v22, 0.0  ;;  %v884_v22 = vadd.f32 %v883_v17, %v3635_v55  ;;  %v962_v26 = vmax.f32 %v882_v0, 0.0  ;;  %2638 = vmatprep.subr.bf16.mxu1 %v3088_v23  ;;  %v3048_v17 = vld [vmem:[#allocation7 + $0x160] ss:$8 sps:$4 sm:$0xff]  }
 0x18a   : > { %v961_v31 = vmax.f32 %v771_v27, 0.0 }
 0x18b   : > { %v1020_v33 = vpack.c.bf16 %v960_v29, %v956_v28  ;;  %v3044_v29 = vld [vmem:[#allocation7 + $0x144] ss:$8 sps:$4 sm:$0xff]  }
 0x18c   : > { %v1021_v35 = vpack.c.bf16 %v961_v31, %v957_v30  ;;  %v774_v36 = vpop.f32.mrb[4].mxu0  ;;  %v963_v30 = vmax.f32 %v884_v22, 0.0  ;;  %2639 = vmatpush3.bf16.msra.mxu1 %v3089_v34  ;;  %v3053_v22 = vld [vmem:[#allocation7 + $0x174] ss:$8 sps:$4 sm:$0xff]  }
 0x18d   : > { %v775_v39 = vadd.f32 %v774_v36, %v3617_v15  ;;  %v776_v40 = vpop.f32.mrb[5].mxu0  ;;  %2640 = vmatprep.subr.bf16.mxu1 %v3090_v38 }
 0x18e   : > { %v777_v43 = vadd.f32 %v776_v40, %v3621_v16  ;;  %v778_v44 = vpop.f32.mrb[6].mxu0  ;;  %1480 = vmatprep.mubr.bf16.mxu0 %v1021_v35  ;;  %v3647_v36 = vpack.c.bf16 %v963_v30, %v959_v21 }
 0x18f   : > { %v779_v46 = vadd.f32 %v778_v44, %v3617_v15  ;;  %v780_v47 = vpop.f32.mrb[7].mxu0  ;;  %1481 = vmatmul.mubr.bf16.vlgmr.msra.gmra.mrb[32].mxu0 %v1020_v33  ;;  %v964_v52 = vmax.f32 %v775_v39, 0.0  ;;  %v3645_v33 = vpack.c.bf16 %v962_v26, %v958_v11 }
 0x190   : > { %v781_v49 = vadd.f32 %v780_v47, %v3621_v16  ;;  %1562 = vmatpush1.bf16.msra.mxu0 %v3030_v37  ;;  %v965_v56 = vmax.f32 %v777_v43, 0.0  ;;  %v887_v37 = vpop.f32.mrb[4].mxu1 }
 0x191   : > { %v968_v53 = vmax.f32 %v779_v46, 0.0  ;;  %1563 = vmatprep.subr.bf16.mxu0 %v3035_v41  ;;  %v3042_v41 = vld [vmem:[#allocation7 + $0x140] ss:$8 sps:$4 sm:$0xff]   ;;  %v888_v42 = vadd.f32 %v887_v37, %v3633_v51  ;;  %v889_v43 = vpop.f32.mrb[5].mxu1  ;;  %v3047_v46 = vld [vmem:[#allocation7 + $0x154] ss:$8 sps:$4 sm:$0xff]  }
 0x192   : > { %v969_v57 = vmax.f32 %v781_v49, 0.0  ;;  %v890_v47 = vadd.f32 %v889_v43, %v3635_v55  ;;  %v891_v48 = vpop.f32.mrb[6].mxu1  ;;  %v3051_v37 = vld [vmem:[#allocation7 + $0x170] ss:$8 sps:$4 sm:$0xff]  }
 0x193   : > { %v1024_v59 = vpack.c.bf16 %v968_v53, %v964_v52  ;;  %v966_v52 = vmax.f32 %v888_v42, 0.0  ;;  %v892_v53 = vadd.f32 %v891_v48, %v3633_v51 }
 0x194   : > { %v1025_v62 = vpack.c.bf16 %v969_v57, %v965_v56  ;;  %1564 = vmatpush1.bf16.msra.mxu0 %v3033_v50  ;;  %v784_v63 = vpop.f32.mrb[8].mxu0  ;;  %v3091_v56 = vld [vmem:[#allocation8 + $0x30] sm:$0xff]  }
 0x195   : > { %v785_v4 = vadd.f32 %v784_v63, %v3617_v15  ;;  %v786_v5 = vpop.f32.mrb[9].mxu0  ;;  %1565 = vmatprep.subr.bf16.mxu0 %v3038_v54  ;;  %v893_v54 = vpop.f32.mrb[7].mxu1  ;;  %v970_v63 = vmax.f32 %v892_v53, 0.0  ;;  %2641 = vmatpush3.bf16.msra.mxu1 %v3091_v56 }
 0x196   : > { %v787_v9 = vadd.f32 %v786_v5, %v3621_v16  ;;  %v788_v10 = vpop.f32.mrb[10].mxu0  ;;  %1490 = vmatprep.mubr.bf16.mxu0 %v1025_v62  ;;  %v894_v60 = vadd.f32 %v893_v54, %v3635_v55  ;;  %v3045_v62 = vld [vmem:[#allocation7 + $0x150] ss:$8 sps:$4 sm:$0xff]  }
 0x197   : > { %v789_v19 = vadd.f32 %v788_v10, %v3617_v15  ;;  %v790_v20 = vpop.f32.mrb[11].mxu0  ;;  %1491 = vmatmul.mubr.bf16.gmra.mrb[36].mxu0 %v1024_v59  ;;  %v972_v27 = vmax.f32 %v785_v4, 0.0  ;;  %v967_v59 = vmax.f32 %v890_v47, 0.0  ;;  %v3657_v7 = vpack.c.bf16 %v970_v63, %v966_v52  ;;  %v897_v10 = vpop.f32.mrb[8].mxu1  ;;  %v3054_v52 = vld [vmem:[#allocation7 + $0x180] ss:$8 sps:$4 sm:$0xff]  }
 0x198   : > { %v791_v24 = vadd.f32 %v790_v20, %v3621_v16  ;;  %1566 = vmatpush1.bf16.msra.mxu0 %v3036_v1  ;;  %v973_v31 = vmax.f32 %v787_v9, 0.0  ;;  %v971_v4 = vmax.f32 %v894_v60, 0.0  ;;  %v898_v18 = vadd.f32 %v897_v10, %v3633_v51  ;;  %v3057_v10 = vld [vmem:[#allocation7 + $0x190] ss:$8 sps:$4 sm:$0xff]  }
 0x199   : > { %v976_v28 = vmax.f32 %v789_v19, 0.0  ;;  %1567 = vmatprep.subr.bf16.mxu0 %v3041_v6  ;;  %v899_v19 = vpop.f32.mrb[9].mxu1 }
 0x19a   : > { %v977_v32 = vmax.f32 %v791_v24, 0.0  ;;  %v3659_v9 = vpack.c.bf16 %v971_v4, %v967_v59  ;;  %v900_v23 = vadd.f32 %v899_v19, %v3635_v55  ;;  %v901_v24 = vpop.f32.mrb[10].mxu1 }
 0x19b   : > { %v1028_v35 = vpack.c.bf16 %v976_v28, %v972_v27  ;;  %v974_v27 = vmax.f32 %v898_v18, 0.0  ;;  %v902_v28 = vadd.f32 %v901_v24, %v3633_v51  ;;  %v3062_v18 = vld [vmem:[#allocation7 + $0x1a4] ss:$8 sps:$4 sm:$0xff]  }
 0x19c   : > { %v1029_v39 = vpack.c.bf16 %v977_v32, %v973_v31  ;;  %1568 = vmatpush1.bf16.msra.mxu0 %v3039_v25  ;;  %v794_v40 = vpop.f32.mrb[12].mxu0  ;;  %v975_v32 = vmax.f32 %v900_v23, 0.0 }
 0x19d   : > { %v795_v44 = vadd.f32 %v794_v40, %v3617_v15  ;;  %v796_v45 = vpop.f32.mrb[13].mxu0  ;;  %1569 = vmatprep.subr.bf16.mxu0 %v3044_v29  ;;  %v903_v29 = vpop.f32.mrb[11].mxu1  ;;  %v978_v38 = vmax.f32 %v902_v28, 0.0  ;;  %v3060_v28 = vld [vmem:[#allocation7 + $0x1a0] ss:$8 sps:$4 sm:$0xff]  }
 0x19e   : > { %v797_v49 = vadd.f32 %v796_v45, %v3621_v16  ;;  %v798_v50 = vpop.f32.mrb[14].mxu0  ;;  %1500 = vmatprep.mubr.bf16.mxu0 %v1029_v39  ;;  %v904_v34 = vadd.f32 %v903_v29, %v3635_v55  ;;  %v907_v48 = vpop.f32.mrb[12].mxu1 }
 0x19f   : > { %v799_v57 = vadd.f32 %v798_v50, %v3617_v15  ;;  %v800_v58 = vpop.f32.mrb[15].mxu0  ;;  %1501 = vmatmul.mubr.bf16.gmra.mrb[40].mxu0 %v1028_v35  ;;  %v980_v1 = vmax.f32 %v795_v44, 0.0  ;;  %v3669_v45 = vpack.c.bf16 %v978_v38, %v974_v27  ;;  %v908_v53 = vadd.f32 %v907_v48, %v3633_v51  ;;  %v909_v54 = vpop.f32.mrb[13].mxu1 }
 0x1a0   : > { %v801_v61 = vadd.f32 %v800_v58, %v3621_v16  ;;  %1570 = vmatpush1.bf16.msra.mxu0 %v3042_v41  ;;  %v981_v5 = vmax.f32 %v797_v49, 0.0  ;;  %v3056_v41 = vld [vmem:[#allocation7 + $0x184] ss:$8 sps:$4 sm:$0xff]   ;;  %v979_v42 = vmax.f32 %v904_v34, 0.0  ;;  %v3059_v58 = vld [vmem:[#allocation7 + $0x194] ss:$8 sps:$4 sm:$0xff]   ;;  %v910_v59 = vadd.f32 %v909_v54, %v3635_v55 }
 0x1a1   : > { %v984_v2 = vmax.f32 %v799_v57, 0.0  ;;  %1571 = vmatprep.subr.bf16.mxu0 %v3047_v46  ;;  %v911_v60 = vpop.f32.mrb[14].mxu1  ;;  %v982_v63 = vmax.f32 %v908_v53, 0.0  ;;  %v3065_v34 = vld [vmem:[#allocation7 + $0x1b4] ss:$8 sps:$4 sm:$0xff]  }
 0x1a2   : > { %v985_v6 = vmax.f32 %v801_v61, 0.0  ;;  %v3671_v47 = vpack.c.bf16 %v979_v42, %v975_v32 }
 0x1a3   : > { %v1032_v8 = vpack.c.bf16 %v984_v2, %v980_v1  ;;  %v912_v1 = vadd.f32 %v911_v60, %v3633_v51  ;;  %v913_v2 = vpop.f32.mrb[15].mxu1 }
 0x1a4   : > { %v1033_v11 = vpack.c.bf16 %v985_v6, %v981_v5  ;;  %1572 = vmatpush1.bf16.msra.mxu0 %v3045_v62  ;;  %v804_v0 = vpop.f32.mrb[16].mxu0  ;;  %v983_v5 = vmax.f32 %v910_v59, 0.0  ;;  %v914_v6 = vadd.f32 %v913_v2, %v3635_v55 }
 0x1a5   : > { %v805_v20 = vadd.f32 %v804_v0, %v3617_v15  ;;  %v806_v21 = vpop.f32.mrb[17].mxu0  ;;  %1573 = vmatprep.subr.bf16.mxu0 %v3050_v3 }
 0x1a6   : > { %v807_v25 = vadd.f32 %v806_v21, %v3621_v16  ;;  %v808_v26 = vpop.f32.mrb[18].mxu0  ;;  %1510 = vmatprep.mubr.bf16.mxu0 %v1033_v11  ;;  %v986_v11 = vmax.f32 %v912_v1, 0.0  ;;  %v987_v19 = vmax.f32 %v914_v6, 0.0 }
 0x1a7   : > { %v809_v30 = vadd.f32 %v808_v26, %v3617_v15  ;;  %v810_v31 = vpop.f32.mrb[19].mxu0  ;;  %1511 = vmatmul.mubr.bf16.gmra.mrb[44].mxu0 %v1032_v8  ;;  %v988_v39 = vmax.f32 %v805_v20, 0.0 }
 0x1a8   : > { %v811_v35 = vadd.f32 %v810_v31, %v3621_v16  ;;  %1574 = vmatpush1.bf16.msra.mxu0 %v3048_v17  ;;  %v989_v43 = vmax.f32 %v807_v25, 0.0  ;;  %v3683_v24 = vpack.c.bf16 %v987_v19, %v983_v5  ;;  %v917_v25 = vpop.f32.mrb[16].mxu1 }
 0x1a9   : > { %v992_v40 = vmax.f32 %v809_v30, 0.0  ;;  %1575 = vmatprep.subr.bf16.mxu0 %v3053_v22  ;;  %v3681_v22 = vpack.c.bf16 %v986_v11, %v982_v63  ;;  %v918_v29 = vadd.f32 %v917_v25, %v3633_v51  ;;  %v919_v30 = vpop.f32.mrb[17].mxu1 }
 0x1aa   : > { %v993_v44 = vmax.f32 %v811_v35, 0.0  ;;  %v920_v35 = vadd.f32 %v919_v30, %v3635_v55 }
 0x1ab   : > { %v1036_v46 = vpack.c.bf16 %v992_v40, %v988_v39  ;;  %v990_v40 = vmax.f32 %v918_v29, 0.0  ;;  %v3069_v29 = vld [vmem:[#allocation7 + $0x1d0] ss:$8 sps:$4 sm:$0xff]  }
 0x1ac   : > { %v1037_v49 = vpack.c.bf16 %v993_v44, %v989_v43  ;;  %1576 = vmatpush1.bf16.msra.mxu0 %v3051_v37  ;;  %v814_v50 = vpop.f32.mrb[20].mxu0  ;;  %v921_v37 = vpop.f32.mrb[18].mxu1 }
 0x1ad   : > { %v815_v56 = vadd.f32 %v814_v50, %v3617_v15  ;;  %v816_v57 = vpop.f32.mrb[21].mxu0  ;;  %1577 = vmatprep.subr.bf16.mxu0 %v3056_v41  ;;  %v922_v41 = vadd.f32 %v921_v37, %v3633_v51  ;;  %v923_v42 = vpop.f32.mrb[19].mxu1  ;;  %v3063_v50 = vld [vmem:[#allocation7 + $0x1b0] ss:$8 sps:$4 sm:$0xff]  }
 0x1ae   : > { %v817_v61 = vadd.f32 %v816_v57, %v3621_v16  ;;  %v818_v62 = vpop.f32.mrb[22].mxu0  ;;  %1520 = vmatprep.mubr.bf16.mxu0 %v1037_v49  ;;  %v924_v48 = vadd.f32 %v923_v42, %v3635_v55  ;;  %v927_v63 = vpop.f32.mrb[20].mxu1 }
 0x1af   : > { %v819_v3 = vadd.f32 %v818_v62, %v3617_v15  ;;  %v820_v4 = vpop.f32.mrb[23].mxu0  ;;  %1521 = vmatmul.mubr.bf16.gmra.mrb[48].mxu0 %v1036_v46  ;;  %v996_v0 = vmax.f32 %v815_v56, 0.0  ;;  %v991_v46 = vmax.f32 %v920_v35, 0.0  ;;  %v3068_v56 = vld [vmem:[#allocation7 + $0x1c4] ss:$8 sps:$4 sm:$0xff]   ;;  %v929_v5 = vpop.f32.mrb[21].mxu1 }
 0x1b0   : > { %v821_v8 = vadd.f32 %v820_v4, %v3621_v16  ;;  %1578 = vmatpush1.bf16.msra.mxu0 %v3054_v52  ;;  %v997_v20 = vmax.f32 %v817_v61, 0.0  ;;  %v994_v52 = vmax.f32 %v922_v41, 0.0  ;;  %v995_v57 = vmax.f32 %v924_v48, 0.0 }
 0x1b1   : > { %v1000_v17 = vmax.f32 %v819_v3, 0.0  ;;  %1579 = vmatprep.subr.bf16.mxu0 %v3059_v58  ;;  %v3066_v3 = vld [vmem:[#allocation7 + $0x1c0] ss:$8 sps:$4 sm:$0xff]   ;;  %v928_v4 = vadd.f32 %v927_v63, %v3633_v51  ;;  %v930_v11 = vadd.f32 %v929_v5, %v3635_v55 }
 0x1b2   : > { %v1001_v21 = vmax.f32 %v821_v8, 0.0  ;;  %v3693_v60 = vpack.c.bf16 %v994_v52, %v990_v40  ;;  %v3695_v62 = vpack.c.bf16 %v995_v57, %v991_v46  ;;  %v3077_v46 = vld [vmem:[#allocation7 + $0x1f4] ss:$8 sps:$4 sm:$0xff]   ;;  %v3075_v57 = vld [vmem:[#allocation7 + $0x1f0] ss:$8 sps:$4 sm:$0xff]  }
 0x1b3   : > { %v1040_v23 = vpack.c.bf16 %v1000_v17, %v996_v0  ;;  %v931_v0 = vpop.f32.mrb[22].mxu1  ;;  %v998_v19 = vmax.f32 %v928_v4, 0.0 }
 0x1b4   : > { %v1041_v26 = vpack.c.bf16 %v1001_v21, %v997_v20  ;;  %1580 = vmatpush1.bf16.msra.mxu0 %v3057_v10  ;;  %v824_v27 = vpop.f32.mrb[24].mxu0  ;;  %v3071_v10 = vld [vmem:[#allocation7 + $0x1d4] ss:$8 sps:$4 sm:$0xff]   ;;  %v932_v20 = vadd.f32 %v931_v0, %v3633_v51  ;;  %v933_v21 = vpop.f32.mrb[23].mxu1 }
 0x1b5   : > { %v825_v31 = vadd.f32 %v824_v27, %v3617_v15  ;;  %v826_v32 = vpop.f32.mrb[25].mxu0  ;;  %1581 = vmatprep.subr.bf16.mxu0 %v3062_v18  ;;  %v934_v27 = vadd.f32 %v933_v21, %v3635_v55  ;;  %v937_v41 = vpop.f32.mrb[24].mxu1 }
 0x1b6   : > { %v827_v38 = vadd.f32 %v826_v32, %v3621_v16  ;;  %v828_v39 = vpop.f32.mrb[26].mxu0  ;;  %1530 = vmatprep.mubr.bf16.mxu0 %v1041_v26  ;;  %v999_v26 = vmax.f32 %v930_v11, 0.0  ;;  %v1002_v30 = vmax.f32 %v932_v20, 0.0 }
 0x1b7   : > { %v829_v43 = vadd.f32 %v828_v39, %v3617_v15  ;;  %v830_v44 = vpop.f32.mrb[27].mxu0  ;;  %1531 = vmatmul.mubr.bf16.gmra.mrb[52].mxu0 %v1040_v23  ;;  %v1004_v53 = vmax.f32 %v825_v31, 0.0  ;;  %v1003_v35 = vmax.f32 %v934_v27, 0.0 }
 0x1b8   : > { %v831_v49 = vadd.f32 %v830_v44, %v3621_v16  ;;  %1582 = vmatpush1.bf16.msra.mxu0 %v3060_v28  ;;  %v1005_v58 = vmax.f32 %v827_v38, 0.0  ;;  %v1042_v39 = vpack.c.bf16 %v1002_v30, %v998_v19  ;;  %v938_v44 = vadd.f32 %v937_v41, %v3633_v51 }
 0x1b9   : > { %v1008_v54 = vmax.f32 %v829_v43, 0.0  ;;  %1583 = vmatprep.subr.bf16.mxu0 %v3065_v34  ;;  %v3074_v34 = vld [vmem:[#allocation7 + $0x1e4] ss:$8 sps:$4 sm:$0xff]   ;;  %v3072_v43 = vld [vmem:[#allocation7 + $0x1e0] ss:$8 sps:$4 sm:$0xff]  }
 0x1ba   : > { %v1009_v59 = vmax.f32 %v831_v49, 0.0 }
 0x1bb   : > { %v1044_v61 = vpack.c.bf16 %v1008_v54, %v1004_v53 }
 0x1bc   : > { %v1045_v1 = vpack.c.bf16 %v1009_v59, %v1005_v58  ;;  %1584 = vmatpush1.bf16.msra.mxu0 %v3063_v50  ;;  %v834_v2 = vpop.f32.mrb[28].mxu0  ;;  %v1006_v50 = vmax.f32 %v938_v44, 0.0 }
 0x1bd   : > { %v835_v6 = vadd.f32 %v834_v2, %v3617_v15  ;;  %v836_v8 = vpop.f32.mrb[29].mxu0  ;;  %1585 = vmatprep.subr.bf16.mxu0 %v3068_v56 }
 0x1be   : > { %v837_v17 = vadd.f32 %v836_v8, %v3621_v16  ;;  %v838_v18 = vpop.f32.mrb[30].mxu0  ;;  %1540 = vmatprep.mubr.bf16.mxu0 %v1045_v1 }
 0x1bf   : > { %v839_v23 = vadd.f32 %v838_v18, %v3617_v15  ;;  %v840_v25 = vpop.f32.mrb[31].mxu0  ;;  %1541 = vmatmul.mubr.bf16.gmra.mrb[56].mxu0 %v1044_v61  ;;  %v1012_v31 = vmax.f32 %v835_v6, 0.0  ;;  %v1043_v15 = vpack.c.bf16 %v1003_v35, %v999_v26 }
 0x1c0   : > { %v841_v28 = vadd.f32 %v840_v25, %v3621_v16  ;;  %1586 = vmatpush1.bf16.msra.mxu0 %v3066_v3  ;;  %v1013_v37 = vmax.f32 %v837_v17, 0.0  ;;  %v939_v16 = vpop.f32.mrb[25].mxu1 }
 0x1c1   : > { %v1016_v32 = vmax.f32 %v839_v23, 0.0  ;;  %1587 = vmatprep.subr.bf16.mxu0 %v3071_v10  ;;  %v940_v48 = vadd.f32 %v939_v16, %v3635_v55  ;;  %v941_v49 = vpop.f32.mrb[26].mxu1 }
 0x1c2   : > { %v1017_v38 = vmax.f32 %v841_v28, 0.0  ;;  %v942_v52 = vadd.f32 %v941_v49, %v3633_v51  ;;  %v943_v53 = vpop.f32.mrb[27].mxu1 }
 0x1c3   : > { %v1048_v40 = vpack.c.bf16 %v1016_v32, %v1012_v31  ;;  %v1007_v54 = vmax.f32 %v940_v48, 0.0  ;;  %v944_v56 = vadd.f32 %v943_v53, %v3635_v55  ;;  %v947_v1 = vpop.f32.mrb[28].mxu1  ;;  %v3095_v31 = vld [vmem:[%s3914_s7 + $0x8] sm:$0xff]  }
 0x1c4   : > { %v1049_v42 = vpack.c.bf16 %v1017_v38, %v1013_v37  ;;  %1588 = vmatpush1.bf16.msra.mxu0 %v3069_v29  ;;  %v1010_v58 = vmax.f32 %v942_v52, 0.0  ;;  %v948_v2 = vadd.f32 %v947_v1, %v3633_v51  ;;  %v949_v3 = vpop.f32.mrb[29].mxu1 }
 0x1c5   : > { %1589 = vmatprep.subr.bf16.mxu0 %v3074_v34  ;;  %v1011_v59 = vmax.f32 %v944_v56, 0.0  ;;  %v950_v4 = vadd.f32 %v949_v3, %v3635_v55  ;;  %v951_v5 = vpop.f32.mrb[30].mxu1 }
 0x1c6   : > { %1550 = vmatprep.mubr.bf16.mxu0 %v1049_v42  ;;  %v1046_v61 = vpack.c.bf16 %v1010_v58, %v1006_v50  ;;  %v1014_v6 = vmax.f32 %v948_v2, 0.0  ;;  %v952_v8 = vadd.f32 %v951_v5, %v3633_v51  ;;  %v953_v10 = vpop.f32.mrb[31].mxu1  ;;  %v3092_v51 = vld [vmem:[#allocation8 + $0x78] sm:$0xff]  }
 0x1c7   : > { %1551 = vmatmul.mubr.bf16.gmra.mrb[60].mxu0 %v1048_v40  ;;  %v1047_v63 = vpack.c.bf16 %v1011_v59, %v1007_v54  ;;  %v954_v11 = vadd.f32 %v953_v10, %v3635_v55  ;;  %v3093_v55 = vld [vmem:[#allocation8 + $0x38] sm:$0xff]   ;;  %2642 = vmatprep.subr.bf16.mxu1 %v3092_v51 }
 0x1c8   : > { %1590 = vmatpush1.bf16.msra.mxu0 %v3072_v43  ;;  %1593 = vmatprep.mubr.bf16.mxu0 %v3647_v36  ;;  %v1015_v36 = vmax.f32 %v950_v4, 0.0  ;;  %v1018_v0 = vmax.f32 %v952_v8, 0.0 }
 0x1c9   : > { %1591 = vmatprep.subr.bf16.mxu0 %v3077_v46  ;;  %v1019_v17 = vmax.f32 %v954_v11, 0.0  ;;  %2643 = vmatpush3.bf16.msra.mxu1 %v3093_v55 }
 0x1ca   : > { %v1050_v18 = vpack.c.bf16 %v1018_v0, %v1014_v6 }
 0x1cb   : > { %v1051_v19 = vpack.c.bf16 %v1019_v17, %v1015_v36 }
 0x1cc   : > { %1592 = vmatpush1.bf16.msra.mxu0 %v3075_v57 }
 0x1cf   : > { %1594 = vmatmul.mubr.bf16.vlgmr.msra.gmra.mrb[32].mxu0 %v3645_v33  ;;  %v3094_v33 = vld [vmem:[%s3914_s7] sm:$0xff]  }
 0x1d0   : > { %1603 = vmatprep.mubr.bf16.mxu0 %v3659_v9  ;;  %2720 = vmatprep.subr.bf16.mxu1 %v3094_v33 }
 0x1d7   : > { %1604 = vmatmul.mubr.bf16.gmra.mrb[36].mxu0 %v3657_v7  ;;  %v1116_v7 = vld [vmem:[%s3911_s4] sm:$0x3] }
 0x1d8   : > { %1613 = vmatprep.mubr.bf16.mxu0 %v3671_v47  ;;  %v3731_v9 = vrot.slane %v1116_v7, %v504_v13 }
 0x1df   : > { %1614 = vmatmul.mubr.bf16.gmra.mrb[40].mxu0 %v3669_v45  ;;  %v3735_v45 = vrot.slane %v1116_v7, %v508_v14 }
 0x1e0   : > { %1623 = vmatprep.mubr.bf16.mxu0 %v3683_v24 }
 0x1e7   : > { %1624 = vmatmul.mubr.bf16.gmra.mrb[44].mxu0 %v3681_v22 }
 0x1e8   : > { %1633 = vmatprep.mubr.bf16.mxu0 %v3695_v62 }
 0x1ef   : > { %1634 = vmatmul.mubr.bf16.gmra.mrb[48].mxu0 %v3693_v60 }
 0x1f0   : > { %1643 = vmatprep.mubr.bf16.mxu0 %v1043_v15  ;;  %v3096_v15 = vld [vmem:[%s3914_s7 + $0x10] sm:$0xff]  }
 0x1f7   : > { %1644 = vmatmul.mubr.bf16.gmra.mrb[52].mxu0 %v1042_v39 }
 0x1f8   : > { %1653 = vmatprep.mubr.bf16.mxu0 %v1047_v63 }
 0x1ff   : > { %1654 = vmatmul.mubr.bf16.gmra.mrb[56].mxu0 %v1046_v61 }
 0x200   : > { %1663 = vmatprep.mubr.bf16.mxu0 %v1051_v19 }
 0x207   : > { %1664 = vmatmul.mubr.bf16.gmra.mrb[60].mxu0 %v1050_v18 }
 0x2a2   : > { %v1595_v47 = vpop.f32.mrb[32].mxu0 }
 0x2a3   : > { %v2776_v22 = vadd.f32 %v1595_v47, %v3731_v9  ;;  %v1597_v24 = vpop.f32.mrb[33].mxu0 }
 0x2a4   : > { %v2777_v60 = vadd.f32 %v1597_v24, %v3735_v45  ;;  %v1599_v62 = vpop.f32.mrb[34].mxu0 }
 0x2a5   : > { %v2778_v20 = vadd.f32 %v1599_v62, %v3731_v9  ;;  %v1601_v21 = vpop.f32.mrb[35].mxu0  ;;  %v1674_v25 = vmax.f32 %v2776_v22, 0.0 }
 0x2a6   : > { %v2779_v23 = vadd.f32 %v1601_v21, %v3735_v45  ;;  %v1675_v13 = vmax.f32 %v2777_v60, 0.0 }
 0x2a7   : > { %v1676_v26 = vmax.f32 %v2778_v20, 0.0 }
 0x2a8   : > { %v1677_v27 = vmax.f32 %v2779_v23, 0.0 }
 0x2a9   : > { %v1706_v28 = vpack.c.bf16 %v1676_v26, %v1674_v25 }
 0x2aa   : > { %v1707_v12 = vpack.c.bf16 %v1677_v27, %v1675_v13  ;;  %v1605_v14 = vpop.f32.mrb[36].mxu0 }
 0x2ab   : > { %v2780_v29 = vadd.f32 %v1605_v14, %v3731_v9  ;;  %v1607_v30 = vpop.f32.mrb[37].mxu0 }
 0x2ac   : > { %v2781_v32 = vadd.f32 %v1607_v30, %v3735_v45  ;;  %v1609_v34 = vpop.f32.mrb[38].mxu0  ;;  %1889 = vmatprep.mubr.bf16.mxu1 %v1707_v12 }
 0x2ad   : > { %v2782_v35 = vadd.f32 %v1609_v34, %v3731_v9  ;;  %v1611_v37 = vpop.f32.mrb[39].mxu0  ;;  %1890 = vmatmul.mubr.bf16.vlgmr.msra.gmra.mrb[32].mxu1 %v1706_v28  ;;  %v1678_v39 = vmax.f32 %v2780_v29, 0.0 }
 0x2ae   : > { %v2783_v38 = vadd.f32 %v1611_v37, %v3735_v45  ;;  %2721 = vmatpush3.bf16.msra.mxu1 %v3094_v33  ;;  %v1679_v41 = vmax.f32 %v2781_v32, 0.0 }
 0x2af   : > { %v1680_v40 = vmax.f32 %v2782_v35, 0.0  ;;  %2722 = vmatprep.subr.bf16.mxu1 %v3095_v31 }
 0x2b0   : > { %v1681_v42 = vmax.f32 %v2783_v38, 0.0 }
 0x2b1   : > { %v1708_v43 = vpack.c.bf16 %v1680_v40, %v1678_v39 }
 0x2b2   : > { %v1709_v44 = vpack.c.bf16 %v1681_v42, %v1679_v41  ;;  %v1615_v16 = vpop.f32.mrb[40].mxu0  ;;  %2723 = vmatpush3.bf16.msra.mxu1 %v3095_v31 }
 0x2b3   : > { %v2784_v46 = vadd.f32 %v1615_v16, %v3731_v9  ;;  %v1617_v48 = vpop.f32.mrb[41].mxu0  ;;  %2724 = vmatprep.subr.bf16.mxu1 %v3096_v15 }
 0x2b4   : > { %v2785_v49 = vadd.f32 %v1617_v48, %v3735_v45  ;;  %v1619_v50 = vpop.f32.mrb[42].mxu0  ;;  %1897 = vmatprep.mubr.bf16.mxu1 %v1709_v44 }
 0x2b5   : > { %v2786_v52 = vadd.f32 %v1619_v50, %v3731_v9  ;;  %v1621_v53 = vpop.f32.mrb[43].mxu0  ;;  %1898 = vmatmul.mubr.bf16.gmra.mrb[36].mxu1 %v1708_v43  ;;  %v1682_v56 = vmax.f32 %v2784_v46, 0.0 }
 0x2b6   : > { %v2787_v54 = vadd.f32 %v1621_v53, %v3735_v45  ;;  %2725 = vmatpush3.bf16.msra.mxu1 %v3096_v15  ;;  %v1683_v58 = vmax.f32 %v2785_v49, 0.0 }
 0x2b7   : > { %v1684_v57 = vmax.f32 %v2786_v52, 0.0 }
 0x2b8   : > { %v1685_v59 = vmax.f32 %v2787_v54, 0.0 }
 0x2b9   : > { %v1710_v61 = vpack.c.bf16 %v1684_v57, %v1682_v56 }
 0x2ba   : > { %v1711_v63 = vpack.c.bf16 %v1685_v59, %v1683_v58  ;;  %v1625_v1 = vpop.f32.mrb[44].mxu0 }
 0x2bb   : > { %v2788_v2 = vadd.f32 %v1625_v1, %v3731_v9  ;;  %v1627_v3 = vpop.f32.mrb[45].mxu0 }
 0x2bc   : > { %v2789_v4 = vadd.f32 %v1627_v3, %v3735_v45  ;;  %v1629_v5 = vpop.f32.mrb[46].mxu0  ;;  %1905 = vmatprep.mubr.bf16.mxu1 %v1711_v63 }
 0x2bd   : > { %v2790_v6 = vadd.f32 %v1629_v5, %v3731_v9  ;;  %v1631_v8 = vpop.f32.mrb[47].mxu0  ;;  %1906 = vmatmul.mubr.bf16.gmra.mrb[40].mxu1 %v1710_v61  ;;  %v1686_v36 = vmax.f32 %v2788_v2, 0.0 }
 0x2be   : > { %v2791_v10 = vadd.f32 %v1631_v8, %v3735_v45  ;;  %v1687_v0 = vmax.f32 %v2789_v4, 0.0 }
 0x2bf   : > { %v1688_v11 = vmax.f32 %v2790_v6, 0.0 }
 0x2c0   : > { %v1689_v17 = vmax.f32 %v2791_v10, 0.0 }
 0x2c1   : > { %v1712_v18 = vpack.c.bf16 %v1688_v11, %v1686_v36  ;;  %v3097_v36 = vld [vmem:[%s3914_s7 + $0x18] sm:$0xff]   ;;  %v3100_v11 = vld [vmem:[%s3914_s7 + $0x30] sm:$0xff]  }
 0x2c2   : > { %v1713_v19 = vpack.c.bf16 %v1689_v17, %v1687_v0  ;;  %v1635_v51 = vpop.f32.mrb[48].mxu0  ;;  %2726 = vmatprep.subr.bf16.mxu1 %v3097_v36  ;;  %v3101_v0 = vld [vmem:[%s3914_s7 + $0x38] sm:$0xff]   ;;  %v3102_v17 = vld [vmem:[%s3916_s9] sm:$0xff]  }
 0x2c3   : > { %v2792_v55 = vadd.f32 %v1635_v51, %v3731_v9  ;;  %v1637_v33 = vpop.f32.mrb[49].mxu0  ;;  %2727 = vmatpush3.bf16.msra.mxu1 %v3097_v36 }
 0x2c4   : > { %v2793_v7 = vadd.f32 %v1637_v33, %v3735_v45  ;;  %v1639_v47 = vpop.f32.mrb[50].mxu0  ;;  %1913 = vmatprep.mubr.bf16.mxu1 %v1713_v19  ;;  %v3796_v19 = vld [vmem:[%s3913_s6] ss:$0 sm:$0xff] }
 0x2c5   : > { %v2794_v22 = vadd.f32 %v1639_v47, %v3731_v9  ;;  %v1641_v24 = vpop.f32.mrb[51].mxu0  ;;  %1914 = vmatmul.mubr.bf16.gmra.mrb[44].mxu1 %v1712_v18  ;;  %v1690_v62 = vmax.f32 %v2792_v55, 0.0 }
 0x2c6   : > { %v2795_v60 = vadd.f32 %v1641_v24, %v3735_v45  ;;  %v1691_v21 = vmax.f32 %v2793_v7, 0.0 }
 0x2c7   : > { %v1692_v20 = vmax.f32 %v2794_v22, 0.0 }
 0x2c8   : > { %v1693_v23 = vmax.f32 %v2795_v60, 0.0 }
 0x2c9   : > { %v1714_v25 = vpack.c.bf16 %v1692_v20, %v1690_v62 }
 0x2ca   : > { %v1715_v26 = vpack.c.bf16 %v1693_v23, %v1691_v21  ;;  %v1645_v13 = vpop.f32.mrb[52].mxu0 }
 0x2cb   : > { %v2796_v27 = vadd.f32 %v1645_v13, %v3731_v9  ;;  %v1647_v28 = vpop.f32.mrb[53].mxu0 }
 0x2cc   : > { %v2797_v12 = vadd.f32 %v1647_v28, %v3735_v45  ;;  %v1649_v14 = vpop.f32.mrb[54].mxu0  ;;  %1921 = vmatprep.mubr.bf16.mxu1 %v1715_v26 }
 0x2cd   : > { %v2798_v29 = vadd.f32 %v1649_v14, %v3731_v9  ;;  %v1651_v30 = vpop.f32.mrb[55].mxu0  ;;  %1922 = vmatmul.mubr.bf16.gmra.mrb[48].mxu1 %v1714_v25  ;;  %v1694_v32 = vmax.f32 %v2796_v27, 0.0 }
 0x2ce   : > { %v2799_v31 = vadd.f32 %v1651_v30, %v3735_v45  ;;  %v1695_v35 = vmax.f32 %v2797_v12, 0.0 }
 0x2cf   : > { %v1696_v34 = vmax.f32 %v2798_v29, 0.0 }
 0x2d0   : > { %v1697_v37 = vmax.f32 %v2799_v31, 0.0 }
 0x2d1   : > { %v1716_v38 = vpack.c.bf16 %v1696_v34, %v1694_v32 }
 0x2d2   : > { %v1717_v39 = vpack.c.bf16 %v1697_v37, %v1695_v35  ;;  %v1655_v40 = vpop.f32.mrb[56].mxu0  ;;  %v3103_v37 = vld [vmem:[%s3916_s9 + $0x8] sm:$0xff]  }
 0x2d3   : > { %v2800_v15 = vadd.f32 %v1655_v40, %v3731_v9  ;;  %v1657_v41 = vpop.f32.mrb[57].mxu0 }
 0x2d4   : > { %v2801_v42 = vadd.f32 %v1657_v41, %v3735_v45  ;;  %v1659_v43 = vpop.f32.mrb[58].mxu0  ;;  %1929 = vmatprep.mubr.bf16.mxu1 %v1717_v39 }
 0x2d5   : > { %v2802_v44 = vadd.f32 %v1659_v43, %v3731_v9  ;;  %v1661_v16 = vpop.f32.mrb[59].mxu0  ;;  %1930 = vmatmul.mubr.bf16.gmra.mrb[52].mxu1 %v1716_v38  ;;  %v1698_v48 = vmax.f32 %v2800_v15, 0.0 }
 0x2d6   : > { %v2803_v46 = vadd.f32 %v1661_v16, %v3735_v45  ;;  %v1699_v50 = vmax.f32 %v2801_v42, 0.0 }
 0x2d7   : > { %v1700_v49 = vmax.f32 %v2802_v44, 0.0 }
 0x2d8   : > { %v1701_v52 = vmax.f32 %v2803_v46, 0.0 }
 0x2d9   : > { %v1718_v53 = vpack.c.bf16 %v1700_v49, %v1698_v48 }
 0x2da   : > { %v1719_v54 = vpack.c.bf16 %v1701_v52, %v1699_v50  ;;  %v1665_v56 = vpop.f32.mrb[60].mxu0 }
 0x2db   : > { %v2804_v57 = vadd.f32 %v1665_v56, %v3731_v9  ;;  %v1667_v58 = vpop.f32.mrb[61].mxu0 }
 0x2dc   : > { %v2805_v59 = vadd.f32 %v1667_v58, %v3735_v45  ;;  %v1669_v61 = vpop.f32.mrb[62].mxu0  ;;  %1937 = vmatprep.mubr.bf16.mxu1 %v1719_v54 }
 0x2dd   : > { %v2806_v63 = vadd.f32 %v1669_v61, %v3731_v9  ;;  %v1671_v1 = vpop.f32.mrb[63].mxu0  ;;  %1938 = vmatmul.mubr.bf16.gmra.mrb[56].mxu1 %v1718_v53  ;;  %v1702_v3 = vmax.f32 %v2804_v57, 0.0  ;;  %v3098_v9 = vld [vmem:[%s3914_s7 + $0x20] sm:$0xff]  }
 0x2de   : > { %v2807_v2 = vadd.f32 %v1671_v1, %v3735_v45  ;;  %v1703_v5 = vmax.f32 %v2805_v59, 0.0  ;;  %2728 = vmatprep.subr.bf16.mxu1 %v3098_v9  ;;  %v3099_v45 = vld [vmem:[%s3914_s7 + $0x28] sm:$0xff]  }
 0x2df   : > { %v1704_v4 = vmax.f32 %v2806_v63, 0.0  ;;  %2729 = vmatpush3.bf16.msra.mxu1 %v3098_v9 }
 0x2e0   : > { %v1705_v6 = vmax.f32 %v2807_v2, 0.0  ;;  %2730 = vmatprep.subr.bf16.mxu1 %v3099_v45 }
 0x2e1   : > { %v1720_v8 = vpack.c.bf16 %v1704_v4, %v1702_v3 }
 0x2e2   : > { %v1721_v10 = vpack.c.bf16 %v1705_v6, %v1703_v5 }
 0x2e3   : > { %2731 = vmatpush3.bf16.msra.mxu1 %v3099_v45 }
 0x2e4   : > { %1945 = vmatprep.mubr.bf16.mxu1 %v1721_v10  ;;  %2732 = vmatprep.subr.bf16.mxu1 %v3100_v11 }
 0x2e5   : > { %1946 = vmatmul.mubr.bf16.gmra.mrb[60].mxu1 %v1720_v8 }
 0x2e7   : > { %2733 = vmatpush3.bf16.msra.mxu1 %v3100_v11 }
 0x2e8   : > { %2734 = vmatprep.subr.bf16.mxu1 %v3101_v0 }
 0x2eb   : > { %2735 = vmatpush3.bf16.msra.mxu1 %v3101_v0 }
 0x2ec   : > { %2752 = vmatprep.subr.bf16.mxu1 %v3102_v17 }
 0x380   : > { %v2644_v18 = vpop.f32.mrb[32].mxu1 }
 0x381   : > { %v2645_v51 = vpop.f32.mrb[33].mxu1 }
 0x382   : > { %v2646_v55 = vadd.f32 %v2645_v51, %v2644_v18  ;;  %v2647_v33 = vpop.f32.mrb[34].mxu1 }
 0x383   : > { %v2648_v7 = vpop.f32.mrb[35].mxu1 }
 0x384   : > { %v1892_v47 = vadd.f32 %v2646_v55, %v3796_v19  ;;  %v2649_v22 = vadd.f32 %v2648_v7, %v2647_v33 }
 0x386   : > { %v1895_v24 = vadd.f32 %v2649_v22, %v3796_v19  ;;  %v1954_v60 = vmax.f32 %v1892_v47, 0.0 }
 0x388   : > { %v1955_v62 = vmax.f32 %v1895_v24, 0.0  ;;  %v2650_v20 = vpop.f32.mrb[36].mxu1 }
 0x389   : > { %v2651_v21 = vpop.f32.mrb[37].mxu1 }
 0x38a   : > { %v2652_v23 = vadd.f32 %v2651_v21, %v2650_v20  ;;  %v2653_v25 = vpop.f32.mrb[38].mxu1  ;;  %v1970_v26 = vpack.c.bf16 %v1955_v62, %v1954_v60 }
 0x38b   : > { %v2654_v13 = vpop.f32.mrb[39].mxu1 }
 0x38c   : > { %v1900_v27 = vadd.f32 %v2652_v23, %v3796_v19  ;;  %v2655_v28 = vadd.f32 %v2654_v13, %v2653_v25  ;;  %2736 = vmatprep.mubr.bf16.mxu1 %v1970_v26 }
 0x38e   : > { %v1903_v12 = vadd.f32 %v2655_v28, %v3796_v19  ;;  %v1956_v14 = vmax.f32 %v1900_v27, 0.0 }
 0x390   : > { %v1957_v29 = vmax.f32 %v1903_v12, 0.0  ;;  %v2656_v30 = vpop.f32.mrb[40].mxu1 }
 0x391   : > { %v2657_v31 = vpop.f32.mrb[41].mxu1 }
 0x392   : > { %v1971_v32 = vpack.c.bf16 %v1957_v29, %v1956_v14  ;;  %v2658_v34 = vadd.f32 %v2657_v31, %v2656_v30  ;;  %v2659_v35 = vpop.f32.mrb[42].mxu1 }
 0x393   : > { %v2660_v38 = vpop.f32.mrb[43].mxu1 }
 0x394   : > { %v1908_v39 = vadd.f32 %v2658_v34, %v3796_v19  ;;  %v2661_v40 = vadd.f32 %v2660_v38, %v2659_v35  ;;  %2737 = vmatmul.mubr.bf16.vlgmr.msra.gmra.mrb[64].mxu1 %v1971_v32  ;;  %v3105_v38 = vld [vmem:[%s3916_s9 + $0x18] sm:$0xff]  }
 0x395   : > { %2753 = vmatpush3.bf16.msra.mxu1 %v3102_v17 }
 0x396   : > { %v1911_v15 = vadd.f32 %v2661_v40, %v3796_v19  ;;  %2754 = vmatprep.subr.bf16.mxu1 %v3103_v37  ;;  %v1958_v41 = vmax.f32 %v1908_v39, 0.0 }
 0x398   : > { %v1959_v42 = vmax.f32 %v1911_v15, 0.0  ;;  %v2662_v43 = vpop.f32.mrb[44].mxu1 }
 0x399   : > { %v2663_v44 = vpop.f32.mrb[45].mxu1  ;;  %2755 = vmatpush3.bf16.msra.mxu1 %v3103_v37  ;;  %v3104_v37 = vld [vmem:[%s3916_s9 + $0x10] sm:$0xff]  }
 0x39a   : > { %v2664_v16 = vadd.f32 %v2663_v44, %v2662_v43  ;;  %v2665_v46 = vpop.f32.mrb[46].mxu1  ;;  %v1972_v48 = vpack.c.bf16 %v1959_v42, %v1958_v41  ;;  %2756 = vmatprep.subr.bf16.mxu1 %v3104_v37 }
 0x39b   : > { %v2666_v49 = vpop.f32.mrb[47].mxu1 }
 0x39c   : > { %v1916_v50 = vadd.f32 %v2664_v16, %v3796_v19  ;;  %v2667_v52 = vadd.f32 %v2666_v49, %v2665_v46  ;;  %2740 = vmatprep.mubr.bf16.mxu1 %v1972_v48 }
 0x39d   : > { %2757 = vmatpush3.bf16.msra.mxu1 %v3104_v37 }
 0x39e   : > { %v1919_v53 = vadd.f32 %v2667_v52, %v3796_v19  ;;  %v1960_v54 = vmax.f32 %v1916_v50, 0.0  ;;  %2758 = vmatprep.subr.bf16.mxu1 %v3105_v38 }
 0x3a0   : > { %v1961_v56 = vmax.f32 %v1919_v53, 0.0  ;;  %v2668_v57 = vpop.f32.mrb[48].mxu1 }
 0x3a1   : > { %v2669_v58 = vpop.f32.mrb[49].mxu1  ;;  %2759 = vmatpush3.bf16.msra.mxu1 %v3105_v38 }
 0x3a2   : > { %v2670_v59 = vadd.f32 %v2669_v58, %v2668_v57  ;;  %v2671_v61 = vpop.f32.mrb[50].mxu1  ;;  %v1973_v63 = vpack.c.bf16 %v1961_v56, %v1960_v54 }
 0x3a3   : > { %v2672_v1 = vpop.f32.mrb[51].mxu1 }
 0x3a4   : > { %v1924_v2 = vadd.f32 %v2670_v59, %v3796_v19  ;;  %v2673_v3 = vadd.f32 %v2672_v1, %v2671_v61  ;;  %2741 = vmatmul.mubr.bf16.gmra.mrb[68].mxu1 %v1973_v63 }
 0x3a6   : > { %v1927_v4 = vadd.f32 %v2673_v3, %v3796_v19  ;;  %v1962_v5 = vmax.f32 %v1924_v2, 0.0 }
 0x3a8   : > { %v1963_v6 = vmax.f32 %v1927_v4, 0.0  ;;  %v2674_v8 = vpop.f32.mrb[52].mxu1 }
 0x3a9   : > { %v2675_v10 = vpop.f32.mrb[53].mxu1 }
 0x3aa   : > { %v2676_v36 = vadd.f32 %v2675_v10, %v2674_v8  ;;  %v2677_v9 = vpop.f32.mrb[54].mxu1  ;;  %v1974_v45 = vpack.c.bf16 %v1963_v6, %v1962_v5 }
 0x3ab   : > { %v2678_v11 = vpop.f32.mrb[55].mxu1 }
 0x3ac   : > { %v1932_v0 = vadd.f32 %v2676_v36, %v3796_v19  ;;  %v2679_v17 = vadd.f32 %v2678_v11, %v2677_v9  ;;  %2744 = vmatprep.mubr.bf16.mxu1 %v1974_v45 }
 0x3ae   : > { %v1935_v18 = vadd.f32 %v2679_v17, %v3796_v19  ;;  %v1964_v51 = vmax.f32 %v1932_v0, 0.0 }
 0x3b0   : > { %v1965_v55 = vmax.f32 %v1935_v18, 0.0  ;;  %v2680_v33 = vpop.f32.mrb[56].mxu1 }
 0x3b1   : > { %v2681_v7 = vpop.f32.mrb[57].mxu1 }
 0x3b2   : > { %v2682_v47 = vadd.f32 %v2681_v7, %v2680_v33  ;;  %v2683_v22 = vpop.f32.mrb[58].mxu1  ;;  %v1975_v24 = vpack.c.bf16 %v1965_v55, %v1964_v51 }
 0x3b3   : > { %v2684_v60 = vpop.f32.mrb[59].mxu1 }
 0x3b4   : > { %v1940_v62 = vadd.f32 %v2682_v47, %v3796_v19  ;;  %v2685_v20 = vadd.f32 %v2684_v60, %v2683_v22  ;;  %2745 = vmatmul.mubr.bf16.gmra.mrb[72].mxu1 %v1975_v24 }
 0x3b6   : > { %v1943_v21 = vadd.f32 %v2685_v20, %v3796_v19  ;;  %v1966_v23 = vmax.f32 %v1940_v62, 0.0 }
 0x3b8   : > { %v1967_v25 = vmax.f32 %v1943_v21, 0.0  ;;  %v2686_v26 = vpop.f32.mrb[60].mxu1 }
 0x3b9   : > { %v2687_v13 = vpop.f32.mrb[61].mxu1 }
 0x3ba   : > { %v2688_v27 = vadd.f32 %v2687_v13, %v2686_v26  ;;  %v2689_v28 = vpop.f32.mrb[62].mxu1  ;;  %v1976_v12 = vpack.c.bf16 %v1967_v25, %v1966_v23 }
 0x3bb   : > { %v2690_v14 = vpop.f32.mrb[63].mxu1 }
 0x3bc   : > { %v1948_v29 = vadd.f32 %v2688_v27, %v3796_v19  ;;  %v2691_v30 = vadd.f32 %v2690_v14, %v2689_v28  ;;  %2748 = vmatprep.mubr.bf16.mxu1 %v1976_v12 }
 0x3be   : > { %v1951_v31 = vadd.f32 %v2691_v30, %v3796_v19  ;;  %v1968_v32 = vmax.f32 %v1948_v29, 0.0  ;;  %v2599_v19 = vld [vmem:[%s3915_s8] ss:$0 sm:$0xff] }
 0x3bf   : > { %v2608_v30 = vld [vmem:[%s3945_s24] ss:$0 sm:$0xff] }
 0x3c0   : > { %v1969_v34 = vmax.f32 %v1951_v31, 0.0 }
 0x3c2   : > { %v1977_v35 = vpack.c.bf16 %v1969_v34, %v1968_v32 }
 0x3c4   : > { %2749 = vmatmul.mubr.bf16.gmra.mrb[76].mxu1 %v1977_v35 }
 0x467   : > { %v2738_v39 = vpop.f32.mrb[64].mxu1 }
 0x468   : > { %v2092_v40 = vadd.f32 %v2738_v39, %v2599_v19  ;;  %v2083_v15 = vpop.f32.mrb[65].mxu1 }
 0x469   : > { %v2084_v41 = vadd.f32 %v2599_v19, %v2083_v15  ;;  %v2739_v42 = vpop.f32.mrb[66].mxu1 }
 0x46a   : > { %v2095_v43 = vadd.f32 %v2739_v42, %v2599_v19  ;;  %v2086_v44 = vpop.f32.mrb[67].mxu1  ;;  %v2148_v46 = vmax.f32 %v2092_v40, 0.0 }
 0x46b   : > { %v2087_v16 = vadd.f32 %v2599_v19, %v2086_v44  ;;  %v2146_v49 = vmax.f32 %v2084_v41, 0.0 }
 0x46c   : > { %v2149_v48 = vmax.f32 %v2095_v43, 0.0 }
 0x46d   : > { %v2147_v50 = vmax.f32 %v2087_v16, 0.0 }
 0x46e   : > { %v2163_v52 = vpack.c.bf16 %v2149_v48, %v2148_v46 }
 0x46f   : > { %v2162_v53 = vpack.c.bf16 %v2147_v50, %v2146_v49 }
 0x471   : > { %2760 = vmatprep.mubr.msk.bf16.mxu1 %vm2209_vm0, %v2162_v53 }
 0x472   : > { %2761 = vmatmul.mubr.msk.bf16.vlgmr.msra.gmra.mrb[80].mxu1 %vm2209_vm0, %v2163_v52 }
 0x477   : > { %v2742_v54 = vpop.f32.mrb[68].mxu1 }
 0x478   : > { %v2108_v56 = vadd.f32 %v2742_v54, %v2599_v19  ;;  %v2099_v57 = vpop.f32.mrb[69].mxu1 }
 0x479   : > { %v2100_v58 = vadd.f32 %v2599_v19, %v2099_v57  ;;  %v2743_v59 = vpop.f32.mrb[70].mxu1 }
 0x47a   : > { %v2111_v61 = vadd.f32 %v2743_v59, %v2599_v19  ;;  %v2102_v63 = vpop.f32.mrb[71].mxu1  ;;  %v2152_v2 = vmax.f32 %v2108_v56, 0.0 }
 0x47b   : > { %v2103_v1 = vadd.f32 %v2599_v19, %v2102_v63  ;;  %v2150_v4 = vmax.f32 %v2100_v58, 0.0 }
 0x47c   : > { %v2153_v3 = vmax.f32 %v2111_v61, 0.0 }
 0x47d   : > { %v2151_v5 = vmax.f32 %v2103_v1, 0.0 }
 0x47e   : > { %v2165_v6 = vpack.c.bf16 %v2153_v3, %v2152_v2 }
 0x47f   : > { %v2164_v8 = vpack.c.bf16 %v2151_v5, %v2150_v4 }
 0x481   : > { %2764 = vmatprep.mubr.msk.bf16.mxu1 %vm2209_vm0, %v2164_v8 }
 0x482   : > { %2765 = vmatmul.mubr.msk.bf16.gmra.mrb[84].mxu1 %vm2209_vm0, %v2165_v6 }
 0x487   : > { %v2746_v10 = vpop.f32.mrb[72].mxu1 }
 0x488   : > { %v2124_v36 = vadd.f32 %v2746_v10, %v2599_v19  ;;  %v2115_v9 = vpop.f32.mrb[73].mxu1 }
 0x489   : > { %v2116_v45 = vadd.f32 %v2599_v19, %v2115_v9  ;;  %v2747_v11 = vpop.f32.mrb[74].mxu1 }
 0x48a   : > { %v2127_v0 = vadd.f32 %v2747_v11, %v2599_v19  ;;  %v2118_v17 = vpop.f32.mrb[75].mxu1  ;;  %v2156_v51 = vmax.f32 %v2124_v36, 0.0 }
 0x48b   : > { %v2119_v18 = vadd.f32 %v2599_v19, %v2118_v17  ;;  %v2154_v33 = vmax.f32 %v2116_v45, 0.0 }
 0x48c   : > { %v2157_v55 = vmax.f32 %v2127_v0, 0.0 }
 0x48d   : > { %v2155_v7 = vmax.f32 %v2119_v18, 0.0 }
 0x48e   : > { %v2167_v47 = vpack.c.bf16 %v2157_v55, %v2156_v51 }
 0x48f   : > { %v2166_v22 = vpack.c.bf16 %v2155_v7, %v2154_v33 }
 0x491   : > { %2768 = vmatprep.mubr.msk.bf16.mxu1 %vm2209_vm0, %v2166_v22 }
 0x492   : > { %2769 = vmatmul.mubr.msk.bf16.gmra.mrb[88].mxu1 %vm2209_vm0, %v2167_v47 }
 0x497   : > { %v2750_v24 = vpop.f32.mrb[76].mxu1 }
 0x498   : > { %v2140_v60 = vadd.f32 %v2750_v24, %v2599_v19  ;;  %v2131_v62 = vpop.f32.mrb[77].mxu1 }
 0x499   : > { %v2132_v20 = vadd.f32 %v2599_v19, %v2131_v62  ;;  %v2751_v21 = vpop.f32.mrb[78].mxu1 }
 0x49a   : > { %v2143_v23 = vadd.f32 %v2751_v21, %v2599_v19  ;;  %v2134_v25 = vpop.f32.mrb[79].mxu1  ;;  %v2160_v13 = vmax.f32 %v2140_v60, 0.0 }
 0x49b   : > { %v2135_v26 = vadd.f32 %v2599_v19, %v2134_v25  ;;  %v2158_v28 = vmax.f32 %v2132_v20, 0.0 }
 0x49c   : > { %v2161_v27 = vmax.f32 %v2143_v23, 0.0 }
 0x49d   : > { %v2159_v12 = vmax.f32 %v2135_v26, 0.0 }
 0x49e   : > { %v2169_v14 = vpack.c.bf16 %v2161_v27, %v2160_v13 }
 0x49f   : > { %v2168_v29 = vpack.c.bf16 %v2159_v12, %v2158_v28 }
 0x4a1   : > { %2772 = vmatprep.mubr.msk.bf16.mxu1 %vm2209_vm0, %v2168_v29 }
 0x4a2   : > { %2773 = vmatmul.mubr.msk.bf16.gmra.mrb[92].mxu1 %vm2209_vm0, %v2169_v14 }
 0x545   : > { %v2762_v31 = vpop.f32.mrb[80].mxu1 }
 0x546   : > { %v2277_v32 = vadd.f32 %v2762_v31, %v2608_v30  ;;  %v2268_v34 = vpop.f32.mrb[81].mxu1 }
 0x547   : > { %v2269_v35 = vadd.f32 %v2608_v30, %v2268_v34  ;;  %v2763_v37 = vpop.f32.mrb[82].mxu1 }
 0x548   : > { %2333 = vst [vmem:[%s3838_s26 + $0x10] sm:$0xff] %v2277_v32  ;;  %v2280_v38 = vadd.f32 %v2763_v37, %v2608_v30  ;;  %v2271_v19 = vpop.f32.mrb[83].mxu1 }
 0x549   : > { %2331 = vst [vmem:[%s3838_s26] sm:$0xff] %v2269_v35  ;;  %v2272_v39 = vadd.f32 %v2608_v30, %v2271_v19 }
 0x54a   : > { %2334 = vst [vmem:[%s3838_s26 + $0x18] sm:$0xff] %v2280_v38 }
 0x54b   : > { %2332 = vst [vmem:[%s3838_s26 + $0x8] sm:$0xff] %v2272_v39 }
 0x555   : > { %v2766_v40 = vpop.f32.mrb[84].mxu1 }
 0x556   : > { %v2293_v15 = vadd.f32 %v2766_v40, %v2608_v30  ;;  %v2284_v41 = vpop.f32.mrb[85].mxu1 }
 0x557   : > { %v2285_v42 = vadd.f32 %v2608_v30, %v2284_v41  ;;  %v2767_v43 = vpop.f32.mrb[86].mxu1 }
 0x558   : > { %2337 = vst [vmem:[%s3838_s26 + $0x30] sm:$0xff] %v2293_v15  ;;  %v2296_v44 = vadd.f32 %v2767_v43, %v2608_v30  ;;  %v2287_v16 = vpop.f32.mrb[87].mxu1 }
 0x559   : > { %2335 = vst [vmem:[%s3838_s26 + $0x20] sm:$0xff] %v2285_v42  ;;  %v2288_v46 = vadd.f32 %v2608_v30, %v2287_v16 }
 0x55a   : > { %2338 = vst [vmem:[%s3838_s26 + $0x38] sm:$0xff] %v2296_v44 }
 0x55b   : > { %2336 = vst [vmem:[%s3838_s26 + $0x28] sm:$0xff] %v2288_v46 }
 0x565   : > { %v2770_v48 = vpop.f32.mrb[88].mxu1 }
 0x566   : > { %v2309_v49 = vadd.f32 %v2770_v48, %v2608_v30  ;;  %v2300_v50 = vpop.f32.mrb[89].mxu1 }
 0x567   : > { %v2301_v52 = vadd.f32 %v2608_v30, %v2300_v50  ;;  %v2771_v53 = vpop.f32.mrb[90].mxu1 }
 0x568   : > { %2341 = vst [vmem:[%s3838_s26 + $0x50] sm:$0xff] %v2309_v49  ;;  %v2312_v54 = vadd.f32 %v2771_v53, %v2608_v30  ;;  %v2303_v56 = vpop.f32.mrb[91].mxu1 }
 0x569   : > { %2339 = vst [vmem:[%s3838_s26 + $0x40] sm:$0xff] %v2301_v52  ;;  %v2304_v57 = vadd.f32 %v2608_v30, %v2303_v56 }
 0x56a   : > { %2342 = vst [vmem:[%s3838_s26 + $0x58] sm:$0xff] %v2312_v54 }
 0x56b   : > { %2340 = vst [vmem:[%s3838_s26 + $0x48] sm:$0xff] %v2304_v57 }
 0x575   : > { %v2774_v58 = vpop.f32.mrb[92].mxu1 }
 0x576   : > { %v2325_v59 = vadd.f32 %v2774_v58, %v2608_v30  ;;  %v2316_v61 = vpop.f32.mrb[93].mxu1 }
 0x577   : > { %v2317_v63 = vadd.f32 %v2608_v30, %v2316_v61  ;;  %v2775_v1 = vpop.f32.mrb[94].mxu1 }
 0x578   : > { %2345 = vst [vmem:[%s3838_s26 + $0x70] sm:$0xff] %v2325_v59  ;;  %v2328_v2 = vadd.f32 %v2775_v1, %v2608_v30  ;;  %v2319_v3 = vpop.f32.mrb[95].mxu1 }
 0x579   : > { %2343 = vst [vmem:[%s3838_s26 + $0x60] sm:$0xff] %v2317_v63  ;;  %v2320_v4 = vadd.f32 %v2608_v30, %v2319_v3 }
 0x57a   : > { %2346 = vst [vmem:[%s3838_s26 + $0x78] sm:$0xff] %v2328_v2 }
 0x57b   : > { %2344 = vst [vmem:[%s3838_s26 + $0x68] sm:$0xff] %v2320_v4 }
 0x57c   : > { %3233 = shalt.err (!%p3230_p4)
}
 0x57d   : > { %s3234_s22 = scalar_lea.hbm %s3858_s23, 2048  ;;  %s3238_s26 = scalar_lea.hbm %s3946_s16, 4096 }
 0x57e   : > { %p3235_p9 = scmp.ne.s32.totalorder %s3858_s23, %s3234_s22  ;;  %p3239_p8 = scmp.lt.u32.totalorder %s3858_s23, %s3946_s16 }
 0x57f   : > { %p3240_p13 = scmp.lt.u32.totalorder %s3238_s26, %s3234_s22  ;;  %p3242_p10 = scmp.lt.u32.totalorder %s3234_s22, %s3858_s23 }
 0x580   : > { %p3236_p0 = pnand %p3235_p9, %p3515_p5 }
 0x581   : > { %p3241_p6 = por %p3240_p13, %p3239_p8 }
 0x582   : > { %p3237_p11 = pneg %p3236_p0 }
 0x583   : > { %p3243_p3 = por %p3242_p10, %p3241_p6 }
 0x585   : > { %p3244_p7 = pnand %p3243_p3, %p3237_p11 }
 0x587   : > { %3247 = shalt.err (!%p3244_p7)
}
 0x588   : > { %s3308_s30 = smov 128   ;;  %s3309_s25 = smov 8  }
 0x589   : > { %2854 = dma.vmem_to_hbm [thread:$0]  (%p3515_p5), %s3860_s12, 2048, %s3858_s23, %s2348_s21, %s3308_s30, %s3308_s30, %s3309_s25  }
 0x58a PF: > { %s3947_s11 = sld [smem:[#allocation15_spill]]  ;;  %s3948_s1 = sld [smem:[#allocation16_spill]] }
 0x58b   : > { %p3950_p2 = scmp.ge.s32.totalorder %s3294_s20, 2 }
 0x590   : > { %s2376_s27 = sand.u32 1, %s3947_s11   ;;  %p3949_p12 = scmp.ne.s32.totalorder %s3948_s1, 0 }
 0x591   : > { %s2377_s22 = scalar_lea.sflag [#allocation4], %s2376_s27 }
 0x592   : > { %p2871_p1 = pnand %p3950_p2, %p3949_p12 }
 0x594   : > { %3277 = dma.done.wait (!%p2871_p1), %s2377_s22, 2048  }
 0x595   : > { %3279 = vsyncadd (!%p2871_p1), %s2377_s22, 4294965248  ;;  %s3951_s10 = smov %s3501_s17  ;;  %p26_p4 = scmp.ge.s32.totalorder %s3501_s17, 4  }
 0x596   : > { %s3952_s17 = smov %s3286_s18  ;;  %s3953_s18 = smov %s3290_s19 }
 0x597   : > { %s3954_s19 = smov %s3511_s15  ;;  %s3955_s20 = smov %s3951_s10 }
 0x598   :  { %28 = sbr.rel (!%p26_p4) target bundleno = 11 (0xb), region = 121 }
 0x59f   :  { %2382 = vsyncpa [#allocation3], 1 }
 0x5a0   :  { %2384 = vsyncpa [#allocation3 + $0x1], 1 }
 0x5a1   :  { %2385 = vsyncpa [#allocation6], 1 }
 0x5a2   :  { %2386 = vsyncpa [#allocation9], 1 }
 0x5a3   :  { %2387 = vsyncpa [#allocation4], 1 }
 0x5a4   :  { %2389 = vsyncpa [#allocation4 + $0x1], 1 }

</bundles_post_ra>
